<compile_context>
chip_gen: v7x
topology: tpu7x:2x2x1
jax: 0.10.0
libtpu: 0.0.40
codegen_flags: <defaults>
</compile_context>

<pallas_src>
import functools

import numpy as np
import jax
import jax.numpy as jnp
from jax import lax
from jax.experimental import pallas as pl
from jax.experimental.pallas import tpu as pltpu


def _flowproj_kernel(fcol_ref, fyrow_ref, xycol_ref, ysrow_ref, out_ref,
                     acc_ref, *, H, W):
    # fcol_ref : (1, 2, tS, 1)  flow, source axis on sublanes (column layout)
    # fyrow_ref: (1, 1, tS)     fy, source axis on lanes (row layout)
    # xycol_ref: (2, tS, 1)     source (x, y) coordinates, column layout
    # ysrow_ref: (1, tS)        source y coordinate, row layout
    # out_ref  : (1, tH, 2W)    [out0 | out1] averaged slab for this row tile
    # acc_ref  : (tH, 3W) f32   [out0 | out1 | cnt] accumulator (VMEM scratch)
    i = pl.program_id(1)                 # output-row tile
    k = pl.program_id(2)                 # source tile (reduction, innermost)
    nk = pl.num_programs(2)
    tH = acc_ref.shape[0]
    tS = fcol_ref.shape[2]

    @pl.when(k == 0)
    def _init():
        acc_ref[...] = jnp.zeros_like(acc_ref)

    # ---- RHS: fused (tS, 3W) = [csum*(-fx*v) | csum*(-fy*v) | csum*v] ----
    fx_c = fcol_ref[0, 0, :, :]          # (tS, 1)
    fy_c = fcol_ref[0, 1, :, :]          # (tS, 1)
    xs_c = xycol_ref[0, :, :]            # (tS, 1)
    ys_c = xycol_ref[1, :, :]            # (tS, 1)
    x2 = xs_c + fx_c
    y2 = ys_c + fy_c
    valid = ((x2 >= 0.0) & (y2 >= 0.0) &
             (x2 <= float(W - 1)) & (y2 <= float(H - 1))).astype(jnp.float32)
    ix_l = x2.astype(jnp.int32)          # trunc == floor for valid (>=0) points
    ix_r = jnp.minimum(ix_l + 1, W - 1)

    j = lax.broadcasted_iota(jnp.int32, (tS, 3 * W), 1)
    seg = (j >= W).astype(jnp.int32) + (j >= 2 * W).astype(jnp.int32)  # 0/1/2
    jw = j - seg * W                                                   # col in W
    # Clamped (boundary) corners double-count exactly like the repeated
    # atomicAdds in the CUDA kernel: (rowT+rowB) x (colL+colR).
    csum3 = ((jw == ix_l).astype(jnp.float32) +
             (jw == ix_r).astype(jnp.float32))                         # (tS, 3W)
    vals = jnp.where(seg == 0, -fx_c,
                     jnp.where(seg == 1, -fy_c, 1.0)) * valid          # (tS, 3W)
    rhs = csum3 * vals

    # ---- LHS: row one-hot sum for this output-row tile, (tH, tS) ----
    fy_r = fyrow_ref[0, :, :]            # (1, tS)
    ys_r = ysrow_ref[...]                # (1, tS)
    y2_r = ys_r + fy_r
    iy_t = y2_r.astype(jnp.int32)        # (1, tS)
    iy_b = jnp.minimum(iy_t + 1, H - 1)
    row = lax.broadcasted_iota(jnp.int32, (tH, tS), 0) + i * tH
    rsum = ((row == iy_t).astype(jnp.float32) +
            (row == iy_b).astype(jnp.float32))                         # (tH, tS)

    # Invalid / padded sources contribute nothing: their RHS columns are zeroed
    # by `valid`, so any garbage iy/ix from the int cast is harmless.
    acc_ref[...] += lax.dot_general(rsum, rhs, (((1,), (0,)), ((), ())),
                                    preferred_element_type=jnp.float32)
    # TODO(synk): exploit bounded flow magnitude (scalar-prefetched per-tile
    # min/max fy) to shrink the rsum row window for large frames.

    @pl.when(k == nk - 1)
    def _finalize():
        acc = acc_ref[...]
        # out is exactly 0 wherever cnt == 0, so 1/max(cnt,1) is sufficient.
        inv = 1.0 / jnp.maximum(acc[:, 2 * W:3 * W], 1.0)              # (tH, W)
        out_ref[0, :, 0:W] = (acc[:, 0:W] * inv).astype(out_ref.dtype)
        out_ref[0, :, W:2 * W] = (acc[:, W:2 * W] * inv).astype(out_ref.dtype)


def flow_projection(flow, *, tile_h=256, tile_s=512):
    """flow: (B, 2, H, W) float32 -> projected (scattered + averaged) flow.

    TODO(synk): kernel_flowproj_updaFillhole (nearest-valid sequential
    hole-fill, only run when input.requires_grad == False) has no clean
    vectorized Pallas equivalent; hole pixels are left at zero here.
    """
    B, C, H, W = flow.shape
    assert C == 2
    S = H * W

    tS = tile_s if S > tile_s else S
    S_pad = pl.cdiv(S, tS) * tS
    tH = tile_h if H > tile_h else H
    H_pad = pl.cdiv(H, tH) * tH
    if tS < S_pad:
        assert tS % 128 == 0, "tile_s must be a multiple of 128 when tiling S"
    if tH < H_pad:
        assert tH % 8 == 0, "tile_h must be a multiple of 8 when tiling H"

    dtype = flow.dtype
    flow_flat = flow.reshape(B, 2, S).astype(jnp.float32)
    if S_pad != S:
        # Zero-padded sources have ys >= H -> invalid -> contribute nothing.
        flow_flat = jnp.pad(flow_flat, ((0, 0), (0, 0), (0, S_pad - S)))
    fcol = flow_flat.reshape(B, 2, S_pad, 1)          # column layout
    fyrow = flow_flat[:, 1:2, :]                      # (B, 1, S_pad) row layout

    sidx = jnp.arange(S_pad, dtype=jnp.int32)
    xs = (sidx % W).astype(jnp.float32)
    ys = (sidx // W).astype(jnp.float32)
    xy_col = jnp.stack([xs, ys], axis=0).reshape(2, S_pad, 1)
    ys_row = ys.reshape(1, S_pad)

    grid = (B, H_pad // tH, S_pad // tS)
    kernel = functools.partial(_flowproj_kernel, H=H, W=W)

    res = pl.pallas_call(
        kernel,
        out_shape=jax.ShapeDtypeStruct((B, H_pad, 2 * W), jnp.float32),
        grid=grid,
        in_specs=[
            pl.BlockSpec((1, 2, tS, 1), lambda b, i, k: (b, 0, k, 0)),
            pl.BlockSpec((1, 1, tS), lambda b, i, k: (b, 0, k)),
            pl.BlockSpec((2, tS, 1), lambda b, i, k: (0, k, 0)),
            pl.BlockSpec((1, tS), lambda b, i, k: (0, k)),
        ],
        out_specs=pl.BlockSpec((1, tH, 2 * W), lambda b, i, k: (b, i, 0)),
        scratch_shapes=[pltpu.VMEM((tH, 3 * W), jnp.float32)],
        compiler_params=pltpu.CompilerParams(
            dimension_semantics=("parallel", "parallel", "arbitrary")),
    )(fcol, fyrow, xy_col, ys_row)

    res = res[:, :H, :]                               # drop padded rows
    out = res.reshape(B, H, 2, W).transpose(0, 2, 1, 3)
    return out.astype(dtype)


def flow_projection_ref(flow):
    """Pure-numpy reference replicating the CUDA scatter + average semantics."""
    flow = np.asarray(flow, dtype=np.float32)
    B, C, H, W = flow.shape
    out = np.zeros((B, 2, H, W), np.float32)
    cnt = np.zeros((B, H, W), np.float32)
    for b in range(B):
        for y in range(H):
            for x in range(W):
                fx = float(flow[b, 0, y, x])
                fy = float(flow[b, 1, y, x])
                x2 = x + fx
                y2 = y + fy
                if x2 >= 0.0 and y2 >= 0.0 and x2 <= W - 1 and y2 <= H - 1:
                    ixl = int(x2)
                    iyt = int(y2)
                    ixr = min(ixl + 1, W - 1)
                    iyb = min(iyt + 1, H - 1)
                    for ty in (iyt, iyb):
                        for tx in (ixl, ixr):
                            out[b, 0, ty, tx] += -fx
                            out[b, 1, ty, tx] += -fy
                            cnt[b, ty, tx] += 1.0
    mask = cnt > 0.0
    for c in range(2):
        ch = out[:, c]
        ch[mask] = ch[mask] / cnt[mask]
        out[:, c] = ch
    return out


if __name__ == "__main__":
    # Test 1: 16x16, explicitly small tiles to exercise the H-tile + S-reduction
    # accumulator path (grid = (2, 2, 2)), plus the default single-tile path.
    key = jax.random.PRNGKey(0)
    B, H, W = 2, 16, 16
    flow = jax.random.uniform(key, (B, 2, H, W), jnp.float32, minval=-4.0, maxval=4.0)
    ref = flow_projection_ref(np.asarray(flow))

    out_tiled = jax.block_until_ready(flow_projection(flow, tile_h=8, tile_s=128))
    assert out_tiled.shape == (B, 2, H, W)
    assert out_tiled.dtype == jnp.float32
    err = np.max(np.abs(np.asarray(out_tiled) - ref))
    assert np.allclose(np.asarray(out_tiled), ref, atol=1e-4, rtol=1e-4), f"tiled max err {err}"

    out_full = jax.block_until_ready(flow_projection(flow))
    err = np.max(np.abs(np.asarray(out_full) - ref))
    assert np.allclose(np.asarray(out_full), ref, atol=1e-4, rtol=1e-4), f"full max err {err}"

    # Test 2: non-square, non-power-of-two W; exercises S padding (960 -> 1024).
    key2 = jax.random.PRNGKey(1)
    B2, H2, W2 = 1, 24, 40
    flow2 = jax.random.uniform(key2, (B2, 2, H2, W2), jnp.float32, minval=-6.0, maxval=6.0)
    out2 = jax.block_until_ready(flow_projection(flow2))
    ref2 = flow_projection_ref(np.asarray(flow2))
    err2 = np.max(np.abs(np.asarray(out2) - ref2))
    assert np.allclose(np.asarray(out2), ref2, atol=1e-4, rtol=1e-4), f"pad max err {err2}"

    print("KERNEL_OK")
</pallas_src>

<mosaic_0001>
module attributes {stable_mosaic.version = 11 : i64} {
  func.func @_flowproj_kernel(%arg0: i32, %arg1: i32, %arg2: i32, %arg3: memref<1x2x128x1xf32, #tpu.memory_space<vmem>>, %arg4: memref<1x1x128xf32, #tpu.memory_space<vmem>>, %arg5: memref<2x128x1xf32, #tpu.memory_space<vmem>>, %arg6: memref<1x128xf32, #tpu.memory_space<vmem>>, %arg7: memref<1x8x32xf32, #tpu.memory_space<vmem>>, %arg8: memref<8x48xf32, #tpu.memory_space<vmem>>) attributes {dimension_semantics = [#tpu.dimension_semantics<parallel>, #tpu.dimension_semantics<parallel>, #tpu.dimension_semantics<arbitrary>], iteration_bounds = array<i64: 2, 2, 2>, scalar_prefetch = 0 : i64, scratch_operands = 1 : i64, tpu.core_type = #tpu.core_type<tc>, window_params = [{transform_indices = @transform_0, window_bounds = array<i64: 1, 2, 128, 1>}, {transform_indices = @transform_1, window_bounds = array<i64: 1, 1, 128>}, {transform_indices = @transform_2, window_bounds = array<i64: 2, 128, 1>}, {transform_indices = @transform_3, window_bounds = array<i64: 1, 128>}, {transform_indices = @transform_4, window_bounds = array<i64: 1, 8, 32>}]} {
    %c0_i32 = arith.constant 0 : i32
    %0 = arith.cmpi eq, %arg2, %c0_i32 : i32
    %1 = arith.extui %0 : i1 to i32
    %c0_i32_0 = arith.constant 0 : i32
    %2 = arith.cmpi ne, %1, %c0_i32_0 : i32
    scf.if %2 {
      %cst_36 = arith.constant 0.000000e+00 : f32
      %98 = vector.broadcast %cst_36 : f32 to vector<8x48xf32>
      %c0_37 = arith.constant 0 : index
      %c0_38 = arith.constant 0 : index
      %99 = vector.load %arg8[%c0_37, %c0_38] : memref<8x48xf32, #tpu.memory_space<vmem>>, vector<8x48xf32>
      tpu.vector_store %arg8[%c0_37, %c0_38], %98 {strides = array<i32>} : memref<8x48xf32, #tpu.memory_space<vmem>>, vector<8x48xf32>,
    } else {
    }
    %c0 = arith.constant 0 : index
    %c0_1 = arith.constant 0 : index
    %c0_2 = arith.constant 0 : index
    %c0_3 = arith.constant 0 : index
    %3 = vector.load %arg3[%c0, %c0_1, %c0_2, %c0_3] : memref<1x2x128x1xf32, #tpu.memory_space<vmem>>, vector<1x1x128x1xf32>
    %4 = vector.shape_cast %3 : vector<1x1x128x1xf32> to vector<128x1xf32>
    %c0_4 = arith.constant 0 : index
    %c1 = arith.constant 1 : index
    %c0_5 = arith.constant 0 : index
    %c0_6 = arith.constant 0 : index
    %5 = vector.load %arg3[%c0_4, %c1, %c0_5, %c0_6] : memref<1x2x128x1xf32, #tpu.memory_space<vmem>>, vector<1x1x128x1xf32>
    %6 = vector.shape_cast %5 : vector<1x1x128x1xf32> to vector<128x1xf32>
    %c0_7 = arith.constant 0 : index
    %c0_8 = arith.constant 0 : index
    %c0_9 = arith.constant 0 : index
    %7 = vector.load %arg5[%c0_7, %c0_8, %c0_9] : memref<2x128x1xf32, #tpu.memory_space<vmem>>, vector<1x128x1xf32>
    %8 = vector.shape_cast %7 : vector<1x128x1xf32> to vector<128x1xf32>
    %c1_10 = arith.constant 1 : index
    %c0_11 = arith.constant 0 : index
    %c0_12 = arith.constant 0 : index
    %9 = vector.load %arg5[%c1_10, %c0_11, %c0_12] : memref<2x128x1xf32, #tpu.memory_space<vmem>>, vector<1x128x1xf32>
    %10 = vector.shape_cast %9 : vector<1x128x1xf32> to vector<128x1xf32>
    %11 = arith.addf %8, %4 : vector<128x1xf32>
    %12 = arith.addf %10, %6 : vector<128x1xf32>
    %cst = arith.constant 0.000000e+00 : f32
    %13 = vector.broadcast %cst : f32 to vector<128x1xf32>
    %14 = arith.cmpf oge, %11, %13 : vector<128x1xf32>
    %cst_13 = arith.constant 0.000000e+00 : f32
    %15 = vector.broadcast %cst_13 : f32 to vector<128x1xf32>
    %16 = arith.cmpf oge, %12, %15 : vector<128x1xf32>
    %17 = arith.andi %14, %16 : vector<128x1xi1>
    %cst_14 = arith.constant 1.500000e+01 : f32
    %18 = vector.broadcast %cst_14 : f32 to vector<128x1xf32>
    %19 = arith.cmpf ole, %11, %18 : vector<128x1xf32>
    %20 = arith.andi %17, %19 : vector<128x1xi1>
    %cst_15 = arith.constant 1.500000e+01 : f32
    %21 = vector.broadcast %cst_15 : f32 to vector<128x1xf32>
    %22 = arith.cmpf ole, %12, %21 : vector<128x1xf32>
    %23 = arith.andi %20, %22 : vector<128x1xi1>
    %24 = arith.extui %23 : vector<128x1xi1> to vector<128x1xi32>
    %25 = arith.sitofp %24 : vector<128x1xi32> to vector<128x1xf32>
    %26 = arith.fptosi %11 : vector<128x1xf32> to vector<128x1xi32>
    %c1_i32 = arith.constant 1 : i32
    %27 = vector.broadcast %c1_i32 : i32 to vector<128x1xi32>
    %28 = arith.addi %26, %27 : vector<128x1xi32>
    %c15_i32 = arith.constant 15 : i32
    %29 = vector.broadcast %c15_i32 : i32 to vector<128x1xi32>
    %30 = arith.minsi %28, %29 : vector<128x1xi32>
    %31 = tpu.iota {dimensions = array<i32: 1>} : vector<128x48xi32>
    %c16_i32 = arith.constant 16 : i32
    %32 = vector.broadcast %c16_i32 : i32 to vector<128x48xi32>
    %33 = arith.cmpi sge, %31, %32 : vector<128x48xi32>
    %34 = arith.extui %33 : vector<128x48xi1> to vector<128x48xi32>
    %c32_i32 = arith.constant 32 : i32
    %35 = vector.broadcast %c32_i32 : i32 to vector<128x48xi32>
    %36 = arith.cmpi sge, %31, %35 : vector<128x48xi32>
    %37 = arith.extui %36 : vector<128x48xi1> to vector<128x48xi32>
    %38 = arith.addi %34, %37 : vector<128x48xi32>
    %c16_i32_16 = arith.constant 16 : i32
    %39 = vector.broadcast %c16_i32_16 : i32 to vector<128x48xi32>
    %40 = arith.muli %38, %39 : vector<128x48xi32>
    %41 = arith.subi %31, %40 : vector<128x48xi32>
    %42 = vector.broadcast %26 : vector<128x1xi32> to vector<128x48xi32>
    %43 = arith.cmpi eq, %41, %42 : vector<128x48xi32>
    %44 = arith.extui %43 : vector<128x48xi1> to vector<128x48xi32>
    %45 = arith.sitofp %44 : vector<128x48xi32> to vector<128x48xf32>
    %46 = vector.broadcast %30 : vector<128x1xi32> to vector<128x48xi32>
    %47 = arith.cmpi eq, %41, %46 : vector<128x48xi32>
    %48 = arith.extui %47 : vector<128x48xi1> to vector<128x48xi32>
    %49 = arith.sitofp %48 : vector<128x48xi32> to vector<128x48xf32>
    %50 = arith.addf %45, %49 : vector<128x48xf32>
    %c0_i32_17 = arith.constant 0 : i32
    %51 = vector.broadcast %c0_i32_17 : i32 to vector<128x48xi32>
    %52 = arith.cmpi eq, %38, %51 : vector<128x48xi32>
    %cst_18 = arith.constant 0.000000e+00 : f32
    %53 = vector.broadcast %cst_18 : f32 to vector<128x1xf32>
    %54 = arith.subf %53, %4 : vector<128x1xf32>
    %c1_i32_19 = arith.constant 1 : i32
    %55 = vector.broadcast %c1_i32_19 : i32 to vector<128x48xi32>
    %56 = arith.cmpi eq, %38, %55 : vector<128x48xi32>
    %cst_20 = arith.constant 0.000000e+00 : f32
    %57 = vector.broadcast %cst_20 : f32 to vector<128x1xf32>
    %58 = arith.subf %57, %6 : vector<128x1xf32>
    %cst_21 = arith.constant 1.000000e+00 : f32
    %59 = vector.shape_cast %58 : vector<128x1xf32> to vector<128x1xf32>
    %60 = vector.broadcast %59 : vector<128x1xf32> to vector<128x48xf32>
    %61 = vector.broadcast %cst_21 : f32 to vector<128x48xf32>
    %62 = arith.select %56, %60, %61 : vector<128x48xi1>, vector<128x48xf32>
    %63 = vector.shape_cast %54 : vector<128x1xf32> to vector<128x1xf32>
    %64 = vector.broadcast %63 : vector<128x1xf32> to vector<128x48xf32>
    %65 = arith.select %52, %64, %62 : vector<128x48xi1>, vector<128x48xf32>
    %66 = vector.broadcast %25 : vector<128x1xf32> to vector<128x48xf32>
    %67 = arith.mulf %65, %66 : vector<128x48xf32>
    %68 = arith.mulf %50, %67 : vector<128x48xf32>
    %c0_22 = arith.constant 0 : index
    %c0_23 = arith.constant 0 : index
    %c0_24 = arith.constant 0 : index
    %69 = vector.load %arg4[%c0_22, %c0_23, %c0_24] : memref<1x1x128xf32, #tpu.memory_space<vmem>>, vector<1x1x128xf32>
    %70 = vector.shape_cast %69 : vector<1x1x128xf32> to vector<1x128xf32>
    %c0_25 = arith.constant 0 : index
    %c0_26 = arith.constant 0 : index
    %71 = vector.load %arg6[%c0_25, %c0_26] : memref<1x128xf32, #tpu.memory_space<vmem>>, vector<1x128xf32>
    %72 = arith.addf %71, %70 : vector<1x128xf32>
    %73 = arith.fptosi %72 : vector<1x128xf32> to vector<1x128xi32>
    %c1_i32_27 = arith.constant 1 : i32
    %74 = vector.broadcast %c1_i32_27 : i32 to vector<1x128xi32>
    %75 = arith.addi %73, %74 : vector<1x128xi32>
    %c15_i32_28 = arith.constant 15 : i32
    %76 = vector.broadcast %c15_i32_28 : i32 to vector<1x128xi32>
    %77 = arith.minsi %75, %76 : vector<1x128xi32>
    %78 = tpu.iota {dimensions = array<i32: 0>} : vector<8x128xi32>
    %c8_i32 = arith.constant 8 : i32
    %79 = arith.muli %arg1, %c8_i32 : i32
    %80 = vector.broadcast %79 : i32 to vector<8x128xi32>
    %81 = arith.addi %78, %80 : vector<8x128xi32>
    %82 = vector.broadcast %73 : vector<1x128xi32> to vector<8x128xi32>
    %83 = arith.cmpi eq, %81, %82 : vector<8x128xi32>
    %84 = arith.extui %83 : vector<8x128xi1> to vector<8x128xi32>
    %85 = arith.sitofp %84 : vector<8x128xi32> to vector<8x128xf32>
    %86 = vector.broadcast %77 : vector<1x128xi32> to vector<8x128xi32>
    %87 = arith.cmpi eq, %81, %86 : vector<8x128xi32>
    %88 = arith.extui %87 : vector<8x128xi1> to vector<8x128xi32>
    %89 = arith.sitofp %88 : vector<8x128xi32> to vector<8x128xf32>
    %90 = arith.addf %85, %89 : vector<8x128xf32>
    %c0_29 = arith.constant 0 : index
    %c0_30 = arith.constant 0 : index
    %91 = vector.load %arg8[%c0_29, %c0_30] : memref<8x48xf32, #tpu.memory_space<vmem>>, vector<8x48xf32>
    %cst_31 = arith.constant dense<0.000000e+00> : vector<8x48xf32>
    %92 = tpu.matmul %90, %68, %cst_31 {dimension_numbers = #tpu.dot_dimension_numbers<[1], [0], [0], [1], [0, 0, 1, 1], [], []>} : vector<8x128xf32>, vector<128x48xf32>, vector<8x48xf32> -> vector<8x48xf32>
    %93 = arith.addf %91, %92 : vector<8x48xf32>
    %c0_32 = arith.constant 0 : index
    %c0_33 = arith.constant 0 : index
    %94 = vector.load %arg8[%c0_32, %c0_33] : memref<8x48xf32, #tpu.memory_space<vmem>>, vector<8x48xf32>
    tpu.vector_store %arg8[%c0_32, %c0_33], %93 {strides = array<i32>} : memref<8x48xf32, #tpu.memory_space<vmem>>, vector<8x48xf32>,
    %c1_i32_34 = arith.constant 1 : i32
    %95 = arith.cmpi eq, %arg2, %c1_i32_34 : i32
    %96 = arith.extui %95 : i1 to i32
    %c0_i32_35 = arith.constant 0 : i32
    %97 = arith.cmpi ne, %96, %c0_i32_35 : i32
    scf.if %97 {
      %c0_36 = arith.constant 0 : index
      %c0_37 = arith.constant 0 : index
      %98 = vector.load %arg8[%c0_36, %c0_37] : memref<8x48xf32, #tpu.memory_space<vmem>>, vector<8x48xf32>
      %99 = vector.extract_strided_slice %98 {offsets = [0, 32], sizes = [8, 16], strides = [1, 1]} : vector<8x48xf32> to vector<8x16xf32>
      %cst_38 = arith.constant 1.000000e+00 : f32
      %100 = vector.broadcast %cst_38 : f32 to vector<8x16xf32>
      %101 = arith.maximumf %99, %100 : vector<8x16xf32>
      %cst_39 = arith.constant 1.000000e+00 : f32
      %102 = vector.broadcast %cst_39 : f32 to vector<8x16xf32>
      %103 = arith.divf %102, %101 : vector<8x16xf32>
      %104 = vector.extract_strided_slice %98 {offsets = [0, 0], sizes = [8, 16], strides = [1, 1]} : vector<8x48xf32> to vector<8x16xf32>
      %105 = arith.mulf %104, %103 : vector<8x16xf32>
      %c0_40 = arith.constant 0 : index
      %c0_41 = arith.constant 0 : index
      %c0_42 = arith.constant 0 : index
      %106 = vector.load %arg7[%c0_40, %c0_41, %c0_42] : memref<1x8x32xf32, #tpu.memory_space<vmem>>, vector<1x8x16xf32>
      %107 = vector.shape_cast %106 : vector<1x8x16xf32> to vector<8x16xf32>
      %108 = vector.shape_cast %105 : vector<8x16xf32> to vector<1x8x16xf32>
      tpu.vector_store %arg7[%c0_40, %c0_41, %c0_42], %108 {strides = array<i32>} : memref<1x8x32xf32, #tpu.memory_space<vmem>>, vector<1x8x16xf32>,
      %109 = vector.extract_strided_slice %98 {offsets = [0, 16], sizes = [8, 16], strides = [1, 1]} : vector<8x48xf32> to vector<8x16xf32>
      %110 = arith.mulf %109, %103 : vector<8x16xf32>
      %c0_43 = arith.constant 0 : index
      %c0_44 = arith.constant 0 : index
      %c16 = arith.constant 16 : index
      %111 = vector.load %arg7[%c0_43, %c0_44, %c16] : memref<1x8x32xf32, #tpu.memory_space<vmem>>, vector<1x8x16xf32>
      %112 = vector.shape_cast %111 : vector<1x8x16xf32> to vector<8x16xf32>
      %113 = vector.shape_cast %110 : vector<8x16xf32> to vector<1x8x16xf32>
      tpu.vector_store %arg7[%c0_43, %c0_44, %c16], %113 {strides = array<i32>} : memref<1x8x32xf32, #tpu.memory_space<vmem>>, vector<1x8x16xf32>,
    } else {
    }
    return
  }
  func.func @transform_0(%arg0: i32, %arg1: i32, %arg2: i32) -> (i32, i32, i32, i32) {
    %c0_i32 = arith.constant 0 : i32
    %c0_i32_0 = arith.constant 0 : i32
    %c0_i32_1 = arith.constant 0 : i32
    return %arg0, %c0_i32, %arg2, %c0_i32_0 : i32, i32, i32, i32
  }
  func.func @transform_1(%arg0: i32, %arg1: i32, %arg2: i32) -> (i32, i32, i32) {
    %c0_i32 = arith.constant 0 : i32
    %c0_i32_0 = arith.constant 0 : i32
    return %arg0, %c0_i32, %arg2 : i32, i32, i32
  }
  func.func @transform_2(%arg0: i32, %arg1: i32, %arg2: i32) -> (i32, i32, i32) {
    %c0_i32 = arith.constant 0 : i32
    %c0_i32_0 = arith.constant 0 : i32
    %c0_i32_1 = arith.constant 0 : i32
    return %c0_i32, %arg2, %c0_i32_0 : i32, i32, i32
  }
  func.func @transform_3(%arg0: i32, %arg1: i32, %arg2: i32) -> (i32, i32) {
    %c0_i32 = arith.constant 0 : i32
    %c0_i32_0 = arith.constant 0 : i32
    return %c0_i32, %arg2 : i32, i32
  }
  func.func @transform_4(%arg0: i32, %arg1: i32, %arg2: i32) -> (i32, i32, i32) {
    %c0_i32 = arith.constant 0 : i32
    %c0_i32_0 = arith.constant 0 : i32
    return %arg0, %arg1, %c0_i32 : i32, i32, i32
  }
}

</mosaic_0001>

<bundles_post_ra>
// kernel: tpu_custom_call.1
= control target key start
LH: loop header
LB: loop body
LE: loop exit
PB: predicated region body
PF: predicated region fallthrough
CT: control target
= control target key end

     0   :  { %s3011_s0 = inlined_call_operand.vmem [shape: f32[2,2,256,1], index: 0, kind: input, shape index: {}]   ;;  %s3012_s1 = inlined_call_operand.vmem [shape: f32[2,1,256], index: 1, kind: input, shape index: {}]   ;;  %s3013_s2 = inlined_call_operand.vmem [shape: f32[2,256,1], index: 2, kind: input, shape index: {}]   ;;  %s3014_s3 = inlined_call_operand.vmem [shape: f32[1,256], index: 3, kind: input, shape index: {}]   ;;  %s3015_s4 = inlined_call_operand.hbm [shape: f32[2,16,32], index: 4, kind: output, shape index: {}]  }
   0x1   :  { %3023 = sst [smem:[#allocation15_spill]] %s3011_s0 }
   0x2   :  { %3024 = sst [smem:[#allocation16_spill]] %s3012_s1 }
   0x3   :  { %3025 = sst [smem:[#allocation17_spill]] %s3013_s2 }
   0x4   :  { %3026 = sst [smem:[#allocation18_spill]] %s3015_s4 }
   0x5   :  { %9 = vsyncpa [#allocation6], 0 }
   0x6   :  { %11 = vsyncpa [#allocation6 + $0x1], 0  ;;  %s2301_s15 = smov 0   ;;  %s2303_s16 = smov 0  }
   0x7   :  { %s2305_s17 = smov 0   ;;  %s2307_s18 = smov 0  }
   0x8   :  { %s2309_s19 = smov 0   ;;  %s2311_s20 = smov 0  }
   0x9   :  { %s2313_s21 = smov 0   ;;  %s2315_s22 = smov 0  }
   0xa   :  { %s2317_s23 = smov 0   ;;  %s2319_s24 = smov 0  }
   0xb   :  { %s2321_s25 = smov 0   ;;  %s2323_s26 = smov 0  }
   0xc   :  { %s2325_s27 = smov 0   ;;  %s2327_s28 = smov 0  }
   0xd LB: > { %3027 = sst [smem:[#allocation8_spill]] %s2246_s23  ;;  %s1737_s29 = sadd.s32 4294967295, %s2266_s28   ;;  %s2266_s28 = sphi %s2327_s28, %s17_s28   ;;  %s2262_s27 = sphi %s2325_s27, %s3055_s27   ;;  %s2258_s26 = sphi %s2323_s26, %s3066_s26   ;;  %s2254_s25 = sphi %s2321_s25, %s3065_s25   ;;  %s2250_s24 = sphi %s2319_s24, %s3052_s24   ;;  %s2246_s23 = sphi %s2317_s23, %s3051_s23   ;;  %s2242_s22 = sphi %s2315_s22, %s3064_s22   ;;  %s2238_s21 = sphi %s2313_s21, %s3063_s21   ;;  %s2234_s20 = sphi %s2311_s20, %s3062_s20   ;;  %s2230_s19 = sphi %s2309_s19, %s3061_s19   ;;  %s2226_s18 = sphi %s2307_s18, %s3060_s18   ;;  %s2222_s17 = sphi %s2305_s17, %s3059_s17   ;;  %s2218_s16 = sphi %s2303_s16, %s3058_s16   ;;  %s2214_s15 = sphi %s2301_s15, %s3057_s15  }
   0xe   : > { %3028 = sst [smem:[#allocation9_spill]] %s2258_s26  ;;  %s29_s5 = sadd.s32 1, %s2254_s25 }
   0xf   : > { %3029 = sst [smem:[#allocation10_spill]] %s2262_s27  ;;  %s32_s6 = sadd.s32 1, %s2258_s26 }
  0x10   : > { %p30_p0 = scmp.ge.s32.totalorder %s29_s5, 2  ;;  %s36_s7 = sadd.s32 1, %s2262_s27 }
  0x11   : > { %s45_s8 = sadd.s32 1, %s2238_s21  ;;  %p52_p1 = scmp.ne.s32.totalorder %s2238_s21, %s2234_s20 }
  0x12   : > { %s3068_s5 = smov (%p30_p0, %s29_s5), 0  ;;  %s3070_s6 = smov (!%p30_p0, %s32_s6), %s2258_s26 }
  0x13   : > { %3030 = sst [smem:[#allocation11_spill]] %s3068_s5  ;;  %s41_s9 = ssub.s32 %s2254_s25, %s3068_s5 }
  0x14   : > { %p53_p2 = scmp.eq.s32.totalorder %s2266_s28, 0  ;;  %p34_p3 = scmp.ge.s32.totalorder %s3070_s6, 2 }
  0x15   : > { %p97_p4 = scmp.eq.s32.totalorder %s41_s9, 0  ;;  %s99_s11 = sadd.s32 1, %s2230_s19 }
  0x16   : > { %p2387_p5 = por %p53_p2, %p52_p1  ;;  %s3072_s6 = smov (%p34_p3, %s3070_s6), 0 }
  0x17   : > { %3032 = sst [smem:[#allocation12_spill]] %s3072_s6  ;;  %s3074_s7 = smov (!%p34_p3, %s36_s7), %s2262_s27 }
  0x18   : > { %s2396_s12 = scalar_select %p97_p4, %s2230_s19, %s99_s11  }
  0x19   : > { %p38_p6 = scmp.ge.s32.totalorder %s3074_s7, 2  ;;  %p106_p7 = scmp.ne.s32.totalorder %s2230_s19, %s2226_s18 }
  0x1a   : > { %3033 = sst [smem:[#allocation13_spill]] %s2396_s12  ;;  %s149_s13 = ssub.s32 %s2258_s26, %s3072_s6 }
  0x1b   : > { %s153_s14 = sadd.s32 1, %s2222_s17  ;;  %s3076_s7 = smov (%p38_p6, %s3074_s7), 0 }
  0x1c   : > { %3034 = sst [smem:[#allocation14_spill]] %s3076_s7  ;;  %p2407_p8 = por %p106_p7, %p53_p2 }
  0x1d   : > { %p163_p9 = scmp.ne.s32.totalorder %s2222_s17, %s2218_s16  ;;  %s40_s5 = ssub.s32 %s2262_s27, %s3076_s7 }
  0x1e   : > { %p164_p10 = scmp.eq.s32.totalorder %s1737_s29, 7  ;;  %s42_s11 = sor.u32 %s41_s9, %s40_s5 }
  0x1f   : > { %s150_s12 = sor.u32 %s149_s13, %s40_s5  ;;  %p43_p11 = scmp.eq.s32.totalorder %s42_s11, 0 }
  0x20   : > { %p151_p12 = scmp.eq.s32.totalorder %s150_s12, 0  ;;  %p2415_p13 = por %p164_p10, %p163_p9 }
  0x21   : > { %p169_p0 = scmp.ne.s32.totalorder %s2218_s16, %s2214_s15  ;;  %s3037_s23 = sadd.s32 4294967294, %s2266_s28  }
  0x22   : > { %s2422_s6 = scalar_select %p43_p11, %s2238_s21, %s45_s8  }
  0x23   : > { %s2425_s26 = scalar_select %p151_p12, %s2222_s17, %s153_s14  }
  0x24   : > { %p170_p1 = scmp.eq.s32.totalorder %s3037_s23, 7  ;;  %p1740_p3 = scmp.ge.s32.totalorder %s2266_s28, 8 }
  0x26   : > { %p2429_p2 = por %p170_p1, %p169_p0  ;;  %186 = sbr.rel (%p1740_p3) target bundleno = 97 (0x61), region = 16 }
  0x2d   : > { %189 = sbr.rel (!%p2387_p5) target bundleno = 71 (0x47), region = 20  ;;  %s191_s29 = sand.u32 (%p2387_p5), 1, %s2238_s21  }
  0x2e   : > { %s1742_s5 = sshll.u32 (%p2387_p5), %s2254_s25, 4  ;;  %s1741_s8 = sshll.u32 (%p2387_p5), %s191_s29, 8 }
  0x2f   : > { %s1743_s9 = sshll.u32 (%p2387_p5), %s2262_s27, 6  ;;  %s3039_s0 = sld [smem:[#allocation15_spill]] (%p2387_p5) }
  0x30   : > { %s196_s12 = sadd.s32 (%p2387_p5), %s1743_s9, %s1742_s5  ;;  %s2447_s10 = scalar_lea.vmem (%p2387_p5), [#allocation3], %s1741_s8 }
  0x31   : > { %s1744_s13 = sshll.u32 (%p2387_p5), %s196_s12, 3 }
  0x35   : > { %s2442_s11 = scalar_lea.vmem %s3039_s0, %s1744_s13 }
  0x36   : > { %v288_v0 = vld [vmem:[%s2442_s11] sm:$0xff]  ;;  %v290_v1 = vld [vmem:[%s2442_s11 + $0x8] sm:$0xff]  ;;  %v292_v2 = vld [vmem:[%s2442_s11 + $0x10] sm:$0xff] }
  0x37   : > { %289 = vst [vmem:[%s2447_s10] sm:$0xff] %v288_v0  ;;  %291 = vst [vmem:[%s2447_s10 + $0x8] sm:$0xff] %v290_v1  ;;  %v294_v3 = vld [vmem:[%s2442_s11 + $0x18] sm:$0xff]  ;;  %v296_v4 = vld [vmem:[%s2442_s11 + $0x20] sm:$0xff] }
  0x38   : > { %293 = vst [vmem:[%s2447_s10 + $0x10] sm:$0xff] %v292_v2  ;;  %v298_v5 = vld [vmem:[%s2442_s11 + $0x28] sm:$0xff]  ;;  %295 = vst [vmem:[%s2447_s10 + $0x18] sm:$0xff] %v294_v3  ;;  %v300_v6 = vld [vmem:[%s2442_s11 + $0x30] sm:$0xff] }
  0x39   : > { %297 = vst [vmem:[%s2447_s10 + $0x20] sm:$0xff] %v296_v4  ;;  %299 = vst [vmem:[%s2447_s10 + $0x28] sm:$0xff] %v298_v5  ;;  %v302_v7 = vld [vmem:[%s2442_s11 + $0x38] sm:$0xff]  ;;  %v304_v8 = vld [vmem:[%s2442_s11 + $0x40] sm:$0xff] }
  0x3a   : > { %301 = vst [vmem:[%s2447_s10 + $0x30] sm:$0xff] %v300_v6  ;;  %303 = vst [vmem:[%s2447_s10 + $0x38] sm:$0xff] %v302_v7  ;;  %v306_v9 = vld [vmem:[%s2442_s11 + $0x48] sm:$0xff]  ;;  %v308_v10 = vld [vmem:[%s2442_s11 + $0x50] sm:$0xff] }
  0x3b   : > { %305 = vst [vmem:[%s2447_s10 + $0x40] sm:$0xff] %v304_v8  ;;  %v310_v11 = vld [vmem:[%s2442_s11 + $0x58] sm:$0xff]  ;;  %307 = vst [vmem:[%s2447_s10 + $0x48] sm:$0xff] %v306_v9  ;;  %v312_v12 = vld [vmem:[%s2442_s11 + $0x60] sm:$0xff] }
  0x3c   : > { %309 = vst [vmem:[%s2447_s10 + $0x50] sm:$0xff] %v308_v10  ;;  %311 = vst [vmem:[%s2447_s10 + $0x58] sm:$0xff] %v310_v11  ;;  %v314_v13 = vld [vmem:[%s2442_s11 + $0x68] sm:$0xff]  ;;  %v316_v14 = vld [vmem:[%s2442_s11 + $0x70] sm:$0xff] }
  0x3d   : > { %313 = vst [vmem:[%s2447_s10 + $0x60] sm:$0xff] %v312_v12  ;;  %315 = vst [vmem:[%s2447_s10 + $0x68] sm:$0xff] %v314_v13  ;;  %v318_v15 = vld [vmem:[%s2442_s11 + $0x78] sm:$0xff]  ;;  %v320_v16 = vld [vmem:[%s2442_s11 + $0x100] sm:$0xff] }
  0x3e   : > { %317 = vst [vmem:[%s2447_s10 + $0x70] sm:$0xff] %v316_v14  ;;  %v322_v17 = vld [vmem:[%s2442_s11 + $0x108] sm:$0xff]  ;;  %319 = vst [vmem:[%s2447_s10 + $0x78] sm:$0xff] %v318_v15  ;;  %v324_v18 = vld [vmem:[%s2442_s11 + $0x110] sm:$0xff] }
  0x3f   : > { %321 = vst [vmem:[%s2447_s10 + $0x80] sm:$0xff] %v320_v16  ;;  %323 = vst [vmem:[%s2447_s10 + $0x88] sm:$0xff] %v322_v17  ;;  %v326_v19 = vld [vmem:[%s2442_s11 + $0x118] sm:$0xff]  ;;  %v328_v20 = vld [vmem:[%s2442_s11 + $0x120] sm:$0xff] }
  0x40   : > { %325 = vst [vmem:[%s2447_s10 + $0x90] sm:$0xff] %v324_v18  ;;  %327 = vst [vmem:[%s2447_s10 + $0x98] sm:$0xff] %v326_v19  ;;  %v330_v21 = vld [vmem:[%s2442_s11 + $0x128] sm:$0xff]  ;;  %v332_v22 = vld [vmem:[%s2442_s11 + $0x130] sm:$0xff] }
  0x41   : > { %329 = vst [vmem:[%s2447_s10 + $0xa0] sm:$0xff] %v328_v20  ;;  %v334_v23 = vld [vmem:[%s2442_s11 + $0x138] sm:$0xff]  ;;  %331 = vst [vmem:[%s2447_s10 + $0xa8] sm:$0xff] %v330_v21  ;;  %v336_v24 = vld [vmem:[%s2442_s11 + $0x140] sm:$0xff] }
  0x42   : > { %333 = vst [vmem:[%s2447_s10 + $0xb0] sm:$0xff] %v332_v22  ;;  %335 = vst [vmem:[%s2447_s10 + $0xb8] sm:$0xff] %v334_v23  ;;  %v338_v25 = vld [vmem:[%s2442_s11 + $0x148] sm:$0xff]  ;;  %v340_v26 = vld [vmem:[%s2442_s11 + $0x150] sm:$0xff] }
  0x43   : > { %337 = vst [vmem:[%s2447_s10 + $0xc0] sm:$0xff] %v336_v24  ;;  %339 = vst [vmem:[%s2447_s10 + $0xc8] sm:$0xff] %v338_v25  ;;  %v342_v27 = vld [vmem:[%s2442_s11 + $0x158] sm:$0xff]  ;;  %v344_v28 = vld [vmem:[%s2442_s11 + $0x160] sm:$0xff] }
  0x44   : > { %341 = vst [vmem:[%s2447_s10 + $0xd0] sm:$0xff] %v340_v26  ;;  %v346_v29 = vld [vmem:[%s2442_s11 + $0x168] sm:$0xff]  ;;  %343 = vst [vmem:[%s2447_s10 + $0xd8] sm:$0xff] %v342_v27  ;;  %v348_v30 = vld [vmem:[%s2442_s11 + $0x170] sm:$0xff] }
  0x45   : > { %345 = vst [vmem:[%s2447_s10 + $0xe0] sm:$0xff] %v344_v28  ;;  %347 = vst [vmem:[%s2447_s10 + $0xe8] sm:$0xff] %v346_v29  ;;  %v350_v31 = vld [vmem:[%s2442_s11 + $0x178] sm:$0xff] }
  0x46   : > { %349 = vst [vmem:[%s2447_s10 + $0xf0] sm:$0xff] %v348_v30  ;;  %351 = vst [vmem:[%s2447_s10 + $0xf8] sm:$0xff] %v350_v31 }
  0x47 PF: > { %367 = sbr.rel (!%p2407_p8) target bundleno = 97 (0x61), region = 62  ;;  %s369_s29 = sand.u32 (%p2407_p8), 1, %s2230_s19  }
  0x48   : > { %s1843_s5 = sshll.u32 (%p2407_p8), %s2254_s25, 7  ;;  %s1745_s8 = sshll.u32 (%p2407_p8), %s369_s29, 8 }
  0x49   : > { %s3040_s2 = sld [smem:[#allocation17_spill]] (%p2407_p8)  ;;  %s2522_s30 = scalar_lea.vmem (%p2407_p8), [#allocation4], %s1745_s8 }
  0x4f   : > { %s2517_s13 = scalar_lea.vmem %s3040_s2, %s1843_s5 }
  0x50   : > { %v464_v32 = vld [vmem:[%s2517_s13] sm:$0xff]  ;;  %v466_v33 = vld [vmem:[%s2517_s13 + $0x8] sm:$0xff]  ;;  %v468_v34 = vld [vmem:[%s2517_s13 + $0x10] sm:$0xff] }
  0x51   : > { %465 = vst [vmem:[%s2522_s30] sm:$0xff] %v464_v32  ;;  %467 = vst [vmem:[%s2522_s30 + $0x8] sm:$0xff] %v466_v33  ;;  %v470_v35 = vld [vmem:[%s2517_s13 + $0x18] sm:$0xff]  ;;  %v472_v36 = vld [vmem:[%s2517_s13 + $0x20] sm:$0xff] }
  0x52   : > { %469 = vst [vmem:[%s2522_s30 + $0x10] sm:$0xff] %v468_v34  ;;  %v474_v37 = vld [vmem:[%s2517_s13 + $0x28] sm:$0xff]  ;;  %471 = vst [vmem:[%s2522_s30 + $0x18] sm:$0xff] %v470_v35  ;;  %v476_v38 = vld [vmem:[%s2517_s13 + $0x30] sm:$0xff] }
  0x53   : > { %473 = vst [vmem:[%s2522_s30 + $0x20] sm:$0xff] %v472_v36  ;;  %475 = vst [vmem:[%s2522_s30 + $0x28] sm:$0xff] %v474_v37  ;;  %v478_v39 = vld [vmem:[%s2517_s13 + $0x38] sm:$0xff]  ;;  %v480_v40 = vld [vmem:[%s2517_s13 + $0x40] sm:$0xff] }
  0x54   : > { %477 = vst [vmem:[%s2522_s30 + $0x30] sm:$0xff] %v476_v38  ;;  %479 = vst [vmem:[%s2522_s30 + $0x38] sm:$0xff] %v478_v39  ;;  %v482_v41 = vld [vmem:[%s2517_s13 + $0x48] sm:$0xff]  ;;  %v484_v42 = vld [vmem:[%s2517_s13 + $0x50] sm:$0xff] }
  0x55   : > { %481 = vst [vmem:[%s2522_s30 + $0x40] sm:$0xff] %v480_v40  ;;  %v486_v43 = vld [vmem:[%s2517_s13 + $0x58] sm:$0xff]  ;;  %483 = vst [vmem:[%s2522_s30 + $0x48] sm:$0xff] %v482_v41  ;;  %v488_v44 = vld [vmem:[%s2517_s13 + $0x60] sm:$0xff] }
  0x56   : > { %485 = vst [vmem:[%s2522_s30 + $0x50] sm:$0xff] %v484_v42  ;;  %487 = vst [vmem:[%s2522_s30 + $0x58] sm:$0xff] %v486_v43  ;;  %v490_v45 = vld [vmem:[%s2517_s13 + $0x68] sm:$0xff]  ;;  %v492_v46 = vld [vmem:[%s2517_s13 + $0x70] sm:$0xff] }
  0x57   : > { %489 = vst [vmem:[%s2522_s30 + $0x60] sm:$0xff] %v488_v44  ;;  %491 = vst [vmem:[%s2522_s30 + $0x68] sm:$0xff] %v490_v45  ;;  %v494_v47 = vld [vmem:[%s2517_s13 + $0x78] sm:$0xff]  ;;  %v496_v48 = vld [vmem:[%s2517_s13 + $0x100] sm:$0xff] }
  0x58   : > { %493 = vst [vmem:[%s2522_s30 + $0x70] sm:$0xff] %v492_v46  ;;  %v498_v49 = vld [vmem:[%s2517_s13 + $0x108] sm:$0xff]  ;;  %495 = vst [vmem:[%s2522_s30 + $0x78] sm:$0xff] %v494_v47  ;;  %v500_v50 = vld [vmem:[%s2517_s13 + $0x110] sm:$0xff] }
  0x59   : > { %497 = vst [vmem:[%s2522_s30 + $0x80] sm:$0xff] %v496_v48  ;;  %499 = vst [vmem:[%s2522_s30 + $0x88] sm:$0xff] %v498_v49  ;;  %v502_v51 = vld [vmem:[%s2517_s13 + $0x118] sm:$0xff]  ;;  %v504_v52 = vld [vmem:[%s2517_s13 + $0x120] sm:$0xff] }
  0x5a   : > { %501 = vst [vmem:[%s2522_s30 + $0x90] sm:$0xff] %v500_v50  ;;  %503 = vst [vmem:[%s2522_s30 + $0x98] sm:$0xff] %v502_v51  ;;  %v506_v53 = vld [vmem:[%s2517_s13 + $0x128] sm:$0xff]  ;;  %v508_v54 = vld [vmem:[%s2517_s13 + $0x130] sm:$0xff] }
  0x5b   : > { %505 = vst [vmem:[%s2522_s30 + $0xa0] sm:$0xff] %v504_v52  ;;  %v510_v55 = vld [vmem:[%s2517_s13 + $0x138] sm:$0xff]  ;;  %507 = vst [vmem:[%s2522_s30 + $0xa8] sm:$0xff] %v506_v53  ;;  %v512_v56 = vld [vmem:[%s2517_s13 + $0x140] sm:$0xff] }
  0x5c   : > { %509 = vst [vmem:[%s2522_s30 + $0xb0] sm:$0xff] %v508_v54  ;;  %511 = vst [vmem:[%s2522_s30 + $0xb8] sm:$0xff] %v510_v55  ;;  %v514_v57 = vld [vmem:[%s2517_s13 + $0x148] sm:$0xff]  ;;  %v516_v58 = vld [vmem:[%s2517_s13 + $0x150] sm:$0xff] }
  0x5d   : > { %513 = vst [vmem:[%s2522_s30 + $0xc0] sm:$0xff] %v512_v56  ;;  %515 = vst [vmem:[%s2522_s30 + $0xc8] sm:$0xff] %v514_v57  ;;  %v518_v59 = vld [vmem:[%s2517_s13 + $0x158] sm:$0xff]  ;;  %v520_v60 = vld [vmem:[%s2517_s13 + $0x160] sm:$0xff] }
  0x5e   : > { %517 = vst [vmem:[%s2522_s30 + $0xd0] sm:$0xff] %v516_v58  ;;  %v522_v61 = vld [vmem:[%s2517_s13 + $0x168] sm:$0xff]  ;;  %519 = vst [vmem:[%s2522_s30 + $0xd8] sm:$0xff] %v518_v59  ;;  %v524_v62 = vld [vmem:[%s2517_s13 + $0x170] sm:$0xff] }
  0x5f   : > { %521 = vst [vmem:[%s2522_s30 + $0xe0] sm:$0xff] %v520_v60  ;;  %523 = vst [vmem:[%s2522_s30 + $0xe8] sm:$0xff] %v522_v61  ;;  %v526_v63 = vld [vmem:[%s2517_s13 + $0x178] sm:$0xff] }
  0x60   : > { %525 = vst [vmem:[%s2522_s30 + $0xf0] sm:$0xff] %v524_v62  ;;  %527 = vst [vmem:[%s2522_s30 + $0xf8] sm:$0xff] %v526_v63 }
  0x61 PF: > { %p1748_p4 = scmp.ge.s32.totalorder %s2266_s28, 1  ;;  %p538_p5 = scmp.lt.s32.totalorder %s2266_s28, 9 }
  0x63   : > { %p539_p6 = pnand %p1748_p4, %p538_p5 }
  0x64   : > { %s545_s23 = sand.u32 (!%p539_p6), 1, %s2234_s20   ;;  %s552_s14 = sand.u32 (!%p539_p6), 1, %s2226_s18  }
  0x65   : > { %542 = sbr.rel (%p539_p6) target bundleno = 789 (0x315), region = 104  ;;  %s1749_s11 = sshll.u32 (!%p539_p6), %s545_s23, 8 }
  0x66   : > { %s1750_s10 = sshll.u32 (!%p539_p6), %s552_s14, 8  ;;  %s3021_s29 = sand.u32 (!%p539_p6), 1, %s2218_s16  }
  0x67   : > { %p592_p7 = scmp.lt.s32.totalorder (!%p539_p6), %s2250_s24, 1  ;;  %s1751_s5 = sshll.u32 (!%p539_p6), %s3021_s29, 3 }
  0x68   : > { %p594_p8 = scmp.lt.s32.totalorder (!%p539_p6), %s2242_s22, 1  ;;  %s3041_s14 = sld [smem:[#allocation16_spill]] (!%p539_p6) }
  0x69   : > { %s2609_s7 = scalar_lea.vmem (!%p539_p6), [#allocation3], %s1749_s11  ;;  %s2611_s29 = scalar_lea.vmem (!%p539_p6), [#allocation4], %s1750_s10 }
  0x6a   : > { %s2613_s27 = scalar_lea.vmem (!%p539_p6), [#allocation5], %s1751_s5  ;;  %p1753_p9 = scmp.ne.s32.totalorder (!%p539_p6), %s2242_s22, 0 }
  0x6c   : > { %s593_s8 = scalar_select %p592_p7, %s2250_s24, 1 }
  0x6d   : > { %s2596_s9 = scalar_select %p594_p8, %s2242_s22, 1 }
  0x6e   : > { %s1752_s12 = sshll.u32 %s593_s8, 1  ;;  %606 = sbr.rel (%p1753_p9) target bundleno = 117 (0x75), region = 116  ;;  %vm607_vm0 = vcmask (!%p1753_p9), 392192   ;;  %v2268_v0 = vmov (!%p1753_p9), 0.0  }
  0x6f   : > { %s2599_s13 = sadd.s32 %s1752_s12, %s2596_s9  ;;  %s602_s18 = scalar_lea.vmem %s3014_s3, %s2596_s9  ;;  %608 = vst.msk [vmem:[#allocation2] sm:$0xff] (!%p1753_p9), %vm607_vm0, %v2268_v0 }
  0x70   : > { %s598_s2 = scalar_lea.vmem %s3041_s14, %s2599_s13 }
  0x75 PF: > { %v1755_v1 = vld [vmem:[%s2609_s7 + $0x88] sm:$0xff]  ;;  %v2269_v4 = vmov 0   ;;  %v609_v8 = vld [vmem:[%s2609_s7] sm:$0xff]  ;;  %v2630_v15 = vld [vmem:[%s2609_s7 + $0x10] sm:$0xff]  ;;  %v2270_v41 = vmov 0.0   ;;  %p1837_p10 = scmp.ne.s32.totalorder %s2242_s22, 1 }
  0x76   : > { %v643_v2 = vld [vmem:[%s2611_s29 + $0x8] sm:$0xff]  ;;  %2081 = vset.pattern.permute.xlu1 %v2269_v4  ;;  %2080 = vset.pattern.permute.xlu0 %v2269_v4  ;;  %v1151_v5 = vsub.f32 0.0, %v1755_v1  ;;  %v642_v9 = vld [vmem:[%s2611_s29] sm:$0xff]  ;;  %v644_v16 = vld [vmem:[%s2611_s29 + $0x10] sm:$0xff]  ;;  %v1133_v38 = vsub.f32 0.0, %v609_v8  ;;  %v1135_v60 = vsub.f32 0.0, %v2630_v15 }
  0x77   : > { %v1771_v3 = vld [vmem:[%s2611_s29 + $0x88] sm:$0xff]  ;;  %v675_v11 = vadd.f32 %v642_v9, %v609_v8  ;;  %v1754_v12 = vld [vmem:[%s2609_s7 + $0x80] sm:$0xff]  ;;  %v2634_v20 = vadd.f32 %v644_v16, %v2630_v15  ;;  %v2641_v23 = vld [vmem:[%s2609_s7 + $0x18] sm:$0xff]  ;;  %s2273_s8 = smov (!%p1837_p10), 96   ;;  %s2274_s9 = smov (!%p1837_p10), 112  }
  0x78   : > { %v2622_v6 = vld [vmem:[%s2609_s7 + $0x8] sm:$0xff]  ;;  %v692_v7 = vadd.f32 %v1771_v3, %v1755_v1  ;;  %v1770_v13 = vld [vmem:[%s2611_s29 + $0x80] sm:$0xff]  ;;  %1173 = vperm.xlu1 %2081, %v1151_v5   ;;  %v645_v24 = vld [vmem:[%s2611_s29 + $0x18] sm:$0xff]  ;;  %v1150_v30 = vsub.f32 0.0, %v1754_v12  ;;  %v1136_v8 = vsub.f32 0.0, %v2641_v23 }
  0x79   : > { %v676_v10 = vadd.f32 %v643_v2, %v2622_v6  ;;  %v691_v14 = vadd.f32 %v1770_v13, %v1754_v12  ;;  %v1920_v17 = vtrunc.f32 %v675_v11  ;;  %vm707_vm5 = vcmp.ge.f32.partialorder %v675_v11, 0.0  ;;  %v1756_v32 = vld [vmem:[%s2609_s7 + $0x90] sm:$0xff]  ;;  %v1757_v36 = vld [vmem:[%s2609_s7 + $0x98] sm:$0xff]  ;;  %v2657_v49 = vld [vmem:[%s2609_s7 + $0x28] sm:$0xff] }
  0x7a   : > { %vm724_vm2 = vcmp.ge.f32.partialorder %v692_v7, 0.0  ;;  %vm755_vm6 = vcmp.le.f32.partialorder %v675_v11, 15.0  ;;  %v1924_v27 = vtrunc.f32 %v2634_v20  ;;  %v678_v28 = vadd.f32 %v645_v24, %v2641_v23  ;;  %v1772_v33 = vld [vmem:[%s2611_s29 + $0x90] sm:$0xff]  ;;  %v1773_v37 = vld [vmem:[%s2611_s29 + $0x98] sm:$0xff]  ;;  %v647_v50 = vld [vmem:[%s2611_s29 + $0x28] sm:$0xff] }
  0x7b   : > { %vm708_vm1 = vcmp.ge.f32.partialorder %v676_v10, 0.0  ;;  %v1922_v18 = vtrunc.f32 %v676_v10  ;;  %vm723_vm3 = vcmp.ge.f32.partialorder %v691_v14, 0.0  ;;  %v1921_v19 = vcvt.f32.s32 %v1920_v17  ;;  %v2662_v51 = vld [vmem:[%s2609_s7 + $0x20] sm:$0xff]  ;;  %v1759_v5 = vld [vmem:[%s2609_s7 + $0xa8] sm:$0xff]  ;;  %v2676_v13 = vld [vmem:[%s2609_s7 + $0x30] sm:$0xff] }
  0x7c   : > { %vm2636_vm4 = vmand %vm708_vm1, %vm724_vm2  ;;  %vm756_vm8 = vcmp.le.f32.partialorder %v676_v10, 15.0  ;;  %vm787_vm11 = vcmp.le.f32.partialorder %v691_v14, 15.0  ;;  %vm788_vm12 = vcmp.le.f32.partialorder %v692_v7, 15.0  ;;  %v1925_v34 = vcvt.f32.s32 %v1924_v27  ;;  %v646_v52 = vld [vmem:[%s2611_s29 + $0x20] sm:$0xff]  ;;  %v648_v14 = vld [vmem:[%s2611_s29 + $0x30] sm:$0xff] }
  0x7d   : > { %v1923_v22 = vcvt.f32.s32 %v1922_v18  ;;  %925 = vperm.xlu0 %2080, %v1921_v19   ;;  %v867_v25 = vadd.s32 1, %v1921_v19  ;;  %vm739_vm7 = vmand %vm707_vm5, %vm723_vm3  ;;  %v1926_v35 = vtrunc.f32 %v678_v28  ;;  %v1134_v39 = vsub.f32 0.0, %v2622_v6  ;;  %v1758_v0 = vld [vmem:[%s2609_s7 + $0xa0] sm:$0xff]  ;;  %v1775_v6 = vld [vmem:[%s2611_s29 + $0xa8] sm:$0xff] }
  0x7e   : > { %vm771_vm10 = vmand %vm739_vm7, %vm755_vm6  ;;  %v693_v40 = vadd.f32 %v1772_v33, %v1756_v32  ;;  %v694_v44 = vadd.f32 %v1773_v37, %v1757_v36  ;;  %v869_v45 = vadd.s32 1, %v1925_v34  ;;  %vm709_vm2 = vcmp.ge.f32.partialorder %v2634_v20, 0.0  ;;  %v1774_v1 = vld [vmem:[%s2611_s29 + $0xa0] sm:$0xff]  ;;  %v2681_v16 = vld [vmem:[%s2609_s7 + $0x38] sm:$0xff] }
  0x7f   : > { %v868_v26 = vadd.s32 1, %v1923_v22  ;;  %vm883_vm9 = vcmp.lt.s32.totalorder %v867_v25, 15  ;;  %vm772_vm14 = vmand %vm2636_vm4, %vm756_vm8  ;;  %v1927_v46 = vcvt.f32.s32 %v1926_v35  ;;  %vm710_vm4 = vcmp.ge.f32.partialorder %v678_v28, 0.0  ;;  %v649_v17 = vld [vmem:[%s2611_s29 + $0x38] sm:$0xff]  ;;  %v1760_v24 = vld [vmem:[%s2609_s7 + $0xb0] sm:$0xff] }
  0x80   : > { %v884_v29 = vsel %vm883_vm9, %v867_v25, 15  ;;  %vm803_vm15 = vmand %vm771_vm10, %vm787_vm11  ;;  %vm725_vm1 = vcmp.ge.f32.partialorder %v693_v40, 0.0  ;;  %vm726_vm3 = vcmp.ge.f32.partialorder %v694_v44, 0.0  ;;  %vm887_vm5 = vcmp.lt.s32.totalorder %v869_v45, 15  ;;  %v1776_v25 = vld [vmem:[%s2611_s29 + $0xb0] sm:$0xff] }
  0x81   : > { %vm885_vm13 = vcmp.lt.s32.totalorder %v868_v26, 15  ;;  %928 = vperm.xlu0 %2080, %v1923_v22   ;;  %1021 = vperm.xlu1 %2081, %v884_v29   ;;  %vm804_vm0 = vmand %vm772_vm14, %vm788_vm12  ;;  %v1786_v42 = vsel %vm803_vm15, 1.0, %v2270_v41  ;;  %v870_v48 = vadd.s32 1, %v1927_v46  ;;  %vm757_vm7 = vcmp.le.f32.partialorder %v2634_v20, 15.0  ;;  %v1777_v29 = vld [vmem:[%s2611_s29 + $0xb8] sm:$0xff] }
  0x82   : > { %v886_v31 = vsel %vm885_vm13, %v868_v26, 15  ;;  %v1787_v43 = vsel %vm804_vm0, 1.0, %v2270_v41  ;;  %vm741_vm6 = vmand %vm709_vm2, %vm725_vm1  ;;  %vm758_vm9 = vcmp.le.f32.partialorder %v678_v28, 15.0  ;;  %v888_v53 = vsel %vm887_vm5, %v869_v45, 15  ;;  %v1761_v28 = vld [vmem:[%s2609_s7 + $0xb8] sm:$0xff] }
  0x83   : > { %v2082_v47 = vpack.i.bf16 %v1787_v43, %v1786_v42  ;;  %vm742_vm8 = vmand %vm710_vm4, %vm726_vm3  ;;  %vm889_vm10 = vcmp.lt.s32.totalorder %v870_v48, 15  ;;  %vm789_vm12 = vcmp.le.f32.partialorder %v693_v40, 15.0  ;;  %v680_v54 = vadd.f32 %v647_v50, %v2657_v49  ;;  %v2694_v40 = vld [vmem:[%s2609_s7 + $0x48] sm:$0xff]  ;;  %v2698_v43 = vld [vmem:[%s2609_s7 + $0x40] sm:$0xff] }
  0x84   : > { %vm773_vm11 = vmand %vm741_vm6, %vm757_vm7  ;;  %v679_v55 = vadd.f32 %v646_v52, %v2662_v51  ;;  %vm790_vm14 = vcmp.le.f32.partialorder %v694_v44, 15.0  ;;  %v1152_v56 = vsub.f32 0.0, %v1756_v32  ;;  %v890_v57 = vsel %vm889_vm10, %v870_v48, 15  ;;  %v651_v42 = vld [vmem:[%s2611_s29 + $0x48] sm:$0xff]  ;;  %v650_v44 = vld [vmem:[%s2611_s29 + $0x40] sm:$0xff] }
  0x85   : > { %1168 = vperm.xlu0 %2080, %v1150_v30   ;;  %1024 = vperm.xlu1 %2081, %v886_v31   ;;  %vm774_vm13 = vmand %vm742_vm8, %vm758_vm9  ;;  %v1930_v58 = vtrunc.f32 %v680_v54  ;;  %v1153_v61 = vsub.f32 0.0, %v1757_v36  ;;  %v695_v9 = vadd.f32 %v1774_v1, %v1758_v0  ;;  %v696_v10 = vadd.f32 %v1775_v6, %v1759_v5  ;;  %v2713_v6 = vld [vmem:[%s2609_s7 + $0x50] sm:$0xff] }
  0x86   : > { %vm805_vm15 = vmand %vm773_vm11, %vm789_vm12  ;;  %v1928_v59 = vtrunc.f32 %v679_v55  ;;  %vm711_vm2 = vcmp.ge.f32.partialorder %v679_v55, 0.0  ;;  %vm712_vm4 = vcmp.ge.f32.partialorder %v680_v54, 0.0  ;;  %v681_v15 = vadd.f32 %v648_v14, %v2676_v13 }
  0x87   : > { %vm806_vm0 = vmand %vm774_vm13, %vm790_vm14  ;;  %v1788_v62 = vsel %vm805_vm15, 1.0, %v2270_v41  ;;  %v1931_v2 = vcvt.f32.s32 %v1930_v58  ;;  %vm727_vm1 = vcmp.ge.f32.partialorder %v695_v9, 0.0  ;;  %vm728_vm3 = vcmp.ge.f32.partialorder %v696_v10, 0.0  ;;  %v1778_v58 = vld [vmem:[%s2611_s29 + $0xc0] sm:$0xff] }
  0x88   : > { %v1789_v63 = vsel %vm806_vm0, 1.0, %v2270_v41  ;;  %v1929_v3 = vcvt.f32.s32 %v1928_v59  ;;  %vm743_vm7 = vmand %vm711_vm2, %vm727_vm1  ;;  %vm759_vm8 = vcmp.le.f32.partialorder %v679_v55, 15.0  ;;  %vm760_vm10 = vcmp.le.f32.partialorder %v680_v54, 15.0 }
  0x89   : > { %1264 = vperm.xlu0 %2080, %v1133_v38   ;;  %1269 = vperm.xlu1 %2081, %v1134_v39   ;;  %v2087_v7 = vpack.i.bf16 %v1789_v63, %v1788_v62  ;;  %v872_v11 = vadd.s32 1, %v1931_v2  ;;  %vm744_vm9 = vmand %vm712_vm4, %vm728_vm3  ;;  %v1932_v20 = vtrunc.f32 %v681_v15  ;;  %vm791_vm12 = vcmp.le.f32.partialorder %v695_v9, 15.0  ;;  %v1779_v62 = vld [vmem:[%s2611_s29 + $0xc8] sm:$0xff]  ;;  %v2718_v9 = vld [vmem:[%s2609_s7 + $0x58] sm:$0xff] }
  0x8a   : > { %v871_v12 = vadd.s32 1, %v1929_v3  ;;  %vm775_vm11 = vmand %vm743_vm7, %vm759_vm8  ;;  %v682_v21 = vadd.f32 %v649_v17, %v2681_v16  ;;  %vm792_vm14 = vcmp.le.f32.partialorder %v696_v10, 15.0  ;;  %v1155_v22 = vsub.f32 0.0, %v1759_v5  ;;  %v653_v10 = vld [vmem:[%s2611_s29 + $0x58] sm:$0xff]  ;;  %v1764_v17 = vld [vmem:[%s2609_s7 + $0xd0] sm:$0xff] }
  0x8b   : > { %vm893_vm5 = vcmp.lt.s32.totalorder %v872_v11, 15  ;;  %vm776_vm13 = vmand %vm744_vm9, %vm760_vm10  ;;  %v1154_v23 = vsub.f32 0.0, %v1758_v0  ;;  %v1933_v26 = vcvt.f32.s32 %v1932_v20  ;;  %v1138_v30 = vsub.f32 0.0, %v2657_v49 }
  0x8c   : > { %vm891_vm6 = vcmp.lt.s32.totalorder %v871_v12, 15  ;;  %v894_v18 = vsel %vm893_vm5, %v872_v11, 15  ;;  %vm807_vm15 = vmand %vm775_vm11, %vm791_vm12  ;;  %v1934_v27 = vtrunc.f32 %v682_v21  ;;  %v1137_v31 = vsub.f32 0.0, %v2662_v51 }
  0x8d   : > { %931 = vperm.xlu1 %2081, %v1925_v34   ;;  %2083 = vperm.xlu0 %2080, %v2082_v47   ;;  %v892_v19 = vsel %vm891_vm6, %v871_v12, 15  ;;  %vm808_vm0 = vmand %vm776_vm13, %vm792_vm14  ;;  %v697_v32 = vadd.f32 %v1776_v25, %v1760_v24  ;;  %v1790_v33 = vsel %vm807_vm15, 1.0, %v2270_v41  ;;  %v698_v35 = vadd.f32 %v1777_v29, %v1761_v28 }
  0x8e   : > { %v1791_v34 = vsel %vm808_vm0, 1.0, %v2270_v41  ;;  %v873_v36 = vadd.s32 1, %v1933_v26  ;;  %v1935_v37 = vcvt.f32.s32 %v1934_v27  ;;  %vm713_vm2 = vcmp.ge.f32.partialorder %v681_v15, 0.0 }
  0x8f   : > { %v2092_v38 = vpack.i.bf16 %v1791_v34, %v1790_v33  ;;  %vm729_vm1 = vcmp.ge.f32.partialorder %v697_v32, 0.0  ;;  %vm730_vm3 = vcmp.ge.f32.partialorder %v698_v35, 0.0  ;;  %vm714_vm4 = vcmp.ge.f32.partialorder %v682_v21, 0.0  ;;  %v2731_v33 = vld [vmem:[%s2609_s7 + $0x68] sm:$0xff] }
  0x90   : > { %vm895_vm5 = vcmp.lt.s32.totalorder %v873_v36, 15  ;;  %v874_v39 = vadd.s32 1, %v1935_v37  ;;  %vm745_vm6 = vmand %vm713_vm2, %vm729_vm1  ;;  %vm761_vm7 = vcmp.le.f32.partialorder %v681_v15, 15.0  ;;  %vm762_vm9 = vcmp.le.f32.partialorder %v682_v21, 15.0  ;;  %v1765_v21 = vld [vmem:[%s2609_s7 + $0xd8] sm:$0xff]  ;;  %v655_v34 = vld [vmem:[%s2611_s29 + $0x68] sm:$0xff] }
  0x91   : > { %1027 = vperm.xlu1 %2081, %v888_v53   ;;  %934 = vperm.xlu0 %2080, %v1927_v46   ;;  %vm746_vm8 = vmand %vm714_vm4, %vm730_vm3  ;;  %v896_v45 = vsel %vm895_vm5, %v873_v36, 15  ;;  %v2271_v46 = vmov 0.0|0.0   ;;  %vm793_vm12 = vcmp.le.f32.partialorder %v697_v32, 15.0  ;;  %v684_v47 = vadd.f32 %v651_v42, %v2694_v40  ;;  %v654_v36 = vld [vmem:[%s2611_s29 + $0x60] sm:$0xff] }
  0x92   : > { %1896 = vmatprep.subr.bf16.mxu0 %v2271_v46  ;;  %vm897_vm10 = vcmp.lt.s32.totalorder %v874_v39, 15  ;;  %vm777_vm11 = vmand %vm745_vm6, %vm761_vm7  ;;  %v683_v48 = vadd.f32 %v650_v44, %v2698_v43  ;;  %vm794_vm14 = vcmp.le.f32.partialorder %v698_v35, 15.0  ;;  %v1156_v49 = vsub.f32 0.0, %v1760_v24  ;;  %v2735_v35 = vld [vmem:[%s2609_s7 + $0x60] sm:$0xff] }
  0x93   : > { %vm778_vm13 = vmand %vm746_vm8, %vm762_vm9  ;;  %v898_v50 = vsel %vm897_vm10, %v874_v39, 15  ;;  %v1938_v51 = vtrunc.f32 %v684_v47  ;;  %v1139_v53 = vsub.f32 0.0, %v2676_v13  ;;  %v1157_v54 = vsub.f32 0.0, %v1761_v28 }
  0x94   : > { %vm809_vm15 = vmand %vm777_vm11, %vm793_vm12  ;;  %v1936_v52 = vtrunc.f32 %v683_v48  ;;  %v1140_v0 = vsub.f32 0.0, %v2681_v16  ;;  %vm715_vm2 = vcmp.ge.f32.partialorder %v683_v48, 0.0  ;;  %vm716_vm4 = vcmp.ge.f32.partialorder %v684_v47, 0.0 }
  0x95   : > { %1178 = vperm.xlu1 %2081, %v1152_v56   ;;  %1030 = vperm.xlu0 %2080, %v890_v57   ;;  %vm810_vm0 = vmand %vm778_vm13, %vm794_vm14  ;;  %v1792_v55 = vsel %vm809_vm15, 1.0, %v2270_v41  ;;  %v1762_v57 = vld [vmem:[%s2609_s7 + $0xc0] sm:$0xff]  ;;  %v1939_v59 = vcvt.f32.s32 %v1938_v51  ;;  %vm763_vm8 = vcmp.le.f32.partialorder %v683_v48, 15.0  ;;  %vm764_vm10 = vcmp.le.f32.partialorder %v684_v47, 15.0 }
  0x96   : > { %v1793_v56 = vsel %vm810_vm0, 1.0, %v2270_v41  ;;  %v699_v1 = vadd.f32 %v1778_v58, %v1762_v57  ;;  %v686_v14 = vadd.f32 %v653_v10, %v2718_v9  ;;  %v1158_v16 = vsub.f32 0.0, %v1762_v57  ;;  %v1782_v51 = vld [vmem:[%s2611_s29 + $0xe0] sm:$0xff]  ;;  %v1768_v10 = vld [vmem:[%s2609_s7 + $0xf0] sm:$0xff] }
  0x97   : > { %v2097_v63 = vpack.i.bf16 %v1793_v56, %v1792_v55  ;;  %v1141_v24 = vsub.f32 0.0, %v2698_v43  ;;  %v687_v39 = vadd.f32 %v654_v36, %v2735_v35  ;;  %v1161_v47 = vsub.f32 0.0, %v1765_v21  ;;  %v1783_v55 = vld [vmem:[%s2611_s29 + $0xe8] sm:$0xff] }
  0x98   : > { %vm731_vm1 = vcmp.ge.f32.partialorder %v699_v1, 0.0  ;;  %vm795_vm12 = vcmp.le.f32.partialorder %v699_v1, 15.0  ;;  %v1942_v20 = vtrunc.f32 %v686_v14  ;;  %v1144_v57 = vsub.f32 0.0, %v2718_v9  ;;  %v2754_v1 = vld [vmem:[%s2609_s7 + $0x78] sm:$0xff] }
  0x99   : > { %1274 = vperm.xlu1 %2081, %v1135_v60   ;;  %1183 = vperm.xlu0 %2080, %v1153_v61   ;;  %v1937_v60 = vcvt.f32.s32 %v1936_v52  ;;  %v1763_v61 = vld [vmem:[%s2609_s7 + $0xc8] sm:$0xff]  ;;  %vm747_vm7 = vmand %vm715_vm2, %vm731_vm1  ;;  %v1944_v44 = vtrunc.f32 %v687_v39 }
  0x9a   : > { %vm779_vm11 = vmand %vm747_vm7, %vm763_vm8  ;;  %v1159_v15 = vsub.f32 0.0, %v1763_v61 }
  0x9b   : > { %v875_v5 = vadd.s32 1, %v1937_v60  ;;  %vm811_vm15 = vmand %vm779_vm11, %vm795_vm12 }
  0x9d   : > { %2088 = vperm.xlu1 %2081, %v2087_v7   ;;  %1279 = vperm.xlu0 %2080, %v1136_v8   ;;  %v652_v7 = vld [vmem:[%s2611_s29 + $0x50] sm:$0xff]  ;;  %vm899_vm6 = vcmp.lt.s32.totalorder %v875_v5, 15 }
  0x9e   : > { %v685_v8 = vadd.f32 %v652_v7, %v2713_v6  ;;  %v900_v12 = vsel %vm899_vm6, %v875_v5, 15 }
  0xa0   : > { %v1940_v13 = vtrunc.f32 %v685_v8  ;;  %vm717_vm2 = vcmp.ge.f32.partialorder %v685_v8, 0.0  ;;  %vm765_vm7 = vcmp.le.f32.partialorder %v685_v8, 15.0 }
  0xa1   : > { %940 = vperm.xlu1 %2081, %v1931_v2   ;;  %937 = vperm.xlu0 %2080, %v1929_v3   ;;  %v700_v2 = vadd.f32 %v1779_v62, %v1763_v61  ;;  %v876_v3 = vadd.s32 1, %v1939_v59  ;;  %v2749_v62 = vld [vmem:[%s2609_s7 + $0x70] sm:$0xff] }
  0xa3   : > { %vm732_vm3 = vcmp.ge.f32.partialorder %v700_v2, 0.0  ;;  %vm901_vm5 = vcmp.lt.s32.totalorder %v876_v3, 15  ;;  %vm796_vm14 = vcmp.le.f32.partialorder %v700_v2, 15.0  ;;  %v657_v2 = vld [vmem:[%s2611_s29 + $0x78] sm:$0xff] }
  0xa4   : > { %vm748_vm9 = vmand %vm716_vm4, %vm732_vm3  ;;  %v902_v11 = vsel %vm901_vm5, %v876_v3, 15  ;;  %vm718_vm4 = vcmp.ge.f32.partialorder %v686_v14, 0.0  ;;  %v690_v7 = vadd.f32 %v657_v2, %v2754_v1 }
  0xa5   : > { %1036 = vperm.xlu1 %2081, %v894_v18   ;;  %1033 = vperm.xlu0 %2080, %v892_v19   ;;  %vm780_vm13 = vmand %vm748_vm9, %vm764_vm10  ;;  %v1780_v18 = vld [vmem:[%s2611_s29 + $0xd0] sm:$0xff]  ;;  %v1941_v19 = vcvt.f32.s32 %v1940_v13  ;;  %vm766_vm9 = vcmp.le.f32.partialorder %v686_v14, 15.0  ;;  %v1769_v14 = vld [vmem:[%s2609_s7 + $0xf8] sm:$0xff] }
  0xa6   : > { %vm812_vm0 = vmand %vm780_vm13, %vm796_vm14  ;;  %v701_v25 = vadd.f32 %v1780_v18, %v1764_v17  ;;  %v1950_v13 = vtrunc.f32 %v690_v7  ;;  %v1145_v18 = vsub.f32 0.0, %v2735_v35 }
  0xa7   : > { %v1795_v27 = vsel %vm812_vm0, 1.0, %v2270_v41  ;;  %v877_v29 = vadd.s32 1, %v1941_v19 }
  0xa8   : > { %vm733_vm1 = vcmp.ge.f32.partialorder %v701_v25, 0.0  ;;  %vm797_vm12 = vcmp.le.f32.partialorder %v701_v25, 15.0 }
  0xa9   : > { %1193 = vperm.xlu1 %2081, %v1155_v22   ;;  %1188 = vperm.xlu0 %2080, %v1154_v23   ;;  %v1781_v22 = vld [vmem:[%s2611_s29 + $0xd8] sm:$0xff]  ;;  %v1142_v23 = vsub.f32 0.0, %v2694_v40  ;;  %vm903_vm5 = vcmp.lt.s32.totalorder %v877_v29, 15  ;;  %vm749_vm6 = vmand %vm717_vm2, %vm733_vm1  ;;  %v1160_v40 = vsub.f32 0.0, %v1764_v17  ;;  %vm719_vm2 = vcmp.ge.f32.partialorder %v687_v39, 0.0 }
  0xaa   : > { %v702_v28 = vadd.f32 %v1781_v22, %v1765_v21  ;;  %vm781_vm11 = vmand %vm749_vm6, %vm765_vm7  ;;  %v1146_v17 = vsub.f32 0.0, %v2731_v33 }
  0xac   : > { %vm734_vm3 = vcmp.ge.f32.partialorder %v702_v28, 0.0  ;;  %vm798_vm14 = vcmp.le.f32.partialorder %v702_v28, 15.0 }
  0xad   : > { %1289 = vperm.xlu1 %2081, %v1138_v30   ;;  %1284 = vperm.xlu0 %2080, %v1137_v31   ;;  %v1943_v30 = vcvt.f32.s32 %v1942_v20  ;;  %vm750_vm8 = vmand %vm718_vm4, %vm734_vm3 }
  0xae   : > { %vm782_vm13 = vmand %vm750_vm8, %vm766_vm9  ;;  %vm767_vm8 = vcmp.le.f32.partialorder %v687_v39, 15.0  ;;  %v1165_v39 = vsub.f32 0.0, %v1769_v14 }
  0xaf   : > { %v878_v32 = vadd.s32 1, %v1943_v30  ;;  %vm814_vm0 = vmand %vm782_vm13, %vm798_vm14 }
  0xb1   : > { %943 = vperm.xlu1 %2081, %v1933_v26   ;;  %2093 = vperm.xlu0 %2080, %v2092_v38   ;;  %v1794_v26 = vsel %vm811_vm15, 1.0, %v2270_v41  ;;  %vm905_vm10 = vcmp.lt.s32.totalorder %v878_v32, 15  ;;  %v688_v38 = vadd.f32 %v655_v34, %v2731_v33  ;;  %vm813_vm15 = vmand %vm781_vm11, %vm797_vm12  ;;  %v1164_v33 = vsub.f32 0.0, %v1768_v10 }
  0xb2   : > { %v2102_v31 = vpack.i.bf16 %v1795_v27, %v1794_v26  ;;  %v906_v42 = vsel %vm905_vm10, %v878_v32, 15  ;;  %v1796_v48 = vsel %vm813_vm15, 1.0, %v2270_v41 }
  0xb3   : > { %v1946_v43 = vtrunc.f32 %v688_v38  ;;  %vm720_vm4 = vcmp.ge.f32.partialorder %v688_v38, 0.0  ;;  %vm768_vm10 = vcmp.le.f32.partialorder %v688_v38, 15.0  ;;  %v1147_v38 = vsub.f32 0.0, %v2749_v62 }
  0xb5   : > { %1039 = vperm.xlu1 %2081, %v896_v45   ;;  %946 = vperm.xlu0 %2080, %v1935_v37   ;;  %v904_v37 = vsel %vm903_vm5, %v877_v29, 15  ;;  %v1143_v45 = vsub.f32 0.0, %v2713_v6  ;;  %v1947_v52 = vcvt.f32.s32 %v1946_v43 }
  0xb9   : > { %1198 = vperm.xlu1 %2081, %v1156_v49   ;;  %1042 = vperm.xlu0 %2080, %v898_v50   ;;  %v1797_v49 = vsel %vm814_vm0, 1.0, %v2270_v41  ;;  %v1766_v50 = vld [vmem:[%s2609_s7 + $0xe0] sm:$0xff] }
  0xba   : > { %v2107_v56 = vpack.i.bf16 %v1797_v49, %v1796_v48  ;;  %v703_v58 = vadd.f32 %v1782_v51, %v1766_v50  ;;  %v1162_v9 = vsub.f32 0.0, %v1766_v50 }
  0xbc   : > { %vm735_vm1 = vcmp.ge.f32.partialorder %v703_v58, 0.0  ;;  %vm799_vm12 = vcmp.le.f32.partialorder %v703_v58, 15.0 }
  0xbd   : > { %1294 = vperm.xlu1 %2081, %v1139_v53   ;;  %1203 = vperm.xlu0 %2080, %v1157_v54   ;;  %v1945_v53 = vcvt.f32.s32 %v1944_v44  ;;  %v1767_v54 = vld [vmem:[%s2609_s7 + $0xe8] sm:$0xff]  ;;  %vm751_vm7 = vmand %vm719_vm2, %vm735_vm1 }
  0xbe   : > { %vm783_vm11 = vmand %vm751_vm7, %vm767_vm8  ;;  %v1163_v8 = vsub.f32 0.0, %v1767_v54 }
  0xbf   : > { %v879_v61 = vadd.s32 1, %v1945_v53  ;;  %vm815_vm15 = vmand %vm783_vm11, %vm799_vm12  ;;  %vm770_vm11 = vcmp.le.f32.partialorder %v690_v7, 15.0 }
  0xc0   : > { %v1798_v20 = vsel %vm815_vm15, 1.0, %v2270_v41 }
  0xc1   : > { %2098 = vperm.xlu1 %2081, %v2097_v63   ;;  %1299 = vperm.xlu0 %2080, %v1140_v0   ;;  %v656_v63 = vld [vmem:[%s2611_s29 + $0x70] sm:$0xff]  ;;  %vm907_vm6 = vcmp.lt.s32.totalorder %v879_v61, 15 }
  0xc2   : > { %v689_v0 = vadd.f32 %v656_v63, %v2749_v62  ;;  %v908_v5 = vsel %vm907_vm6, %v879_v61, 15 }
  0xc4   : > { %v1948_v6 = vtrunc.f32 %v689_v0  ;;  %vm721_vm2 = vcmp.ge.f32.partialorder %v689_v0, 0.0  ;;  %vm769_vm7 = vcmp.le.f32.partialorder %v689_v0, 15.0 }
  0xc5   : > { %952 = vperm.xlu1 %2081, %v1939_v59   ;;  %949 = vperm.xlu0 %2080, %v1937_v60   ;;  %v704_v59 = vadd.f32 %v1783_v55, %v1767_v54  ;;  %v880_v60 = vadd.s32 1, %v1947_v52 }
  0xc7   : > { %vm736_vm3 = vcmp.ge.f32.partialorder %v704_v59, 0.0  ;;  %vm909_vm5 = vcmp.lt.s32.totalorder %v880_v60, 15  ;;  %vm800_vm14 = vcmp.le.f32.partialorder %v704_v59, 15.0 }
  0xc8   : > { %vm752_vm9 = vmand %vm720_vm4, %vm736_vm3  ;;  %v910_v3 = vsel %vm909_vm5, %v880_v60, 15  ;;  %vm722_vm4 = vcmp.ge.f32.partialorder %v690_v7, 0.0 }
  0xc9   : > { %1048 = vperm.xlu1 %2081, %v902_v11   ;;  %1045 = vperm.xlu0 %2080, %v900_v12   ;;  %vm784_vm13 = vmand %vm752_vm9, %vm768_vm10  ;;  %v1784_v11 = vld [vmem:[%s2611_s29 + $0xf0] sm:$0xff]  ;;  %v1949_v12 = vcvt.f32.s32 %v1948_v6 }
  0xca   : > { %vm816_vm0 = vmand %vm784_vm13, %vm800_vm14 }
  0xcb   : > { %v1799_v21 = vsel %vm816_vm0, 1.0, %v2270_v41 }
  0xcc   : > { %v2112_v26 = vpack.i.bf16 %v1799_v21, %v1798_v20 }
  0xcd   : > { %1213 = vperm.xlu1 %2081, %v1159_v15   ;;  %1208 = vperm.xlu0 %2080, %v1158_v16   ;;  %v1785_v15 = vld [vmem:[%s2611_s29 + $0xf8] sm:$0xff]  ;;  %v915_v16 = vlaneseq }
  0xce   : > { %v706_v22 = vadd.f32 %v1785_v15, %v1769_v14 }
  0xcf   : > { %v916_v25 = vand.u32 127, %v915_v16 }
  0xd0   : > { %vm738_vm3 = vcmp.ge.f32.partialorder %v706_v22, 0.0  ;;  %vm802_vm0 = vcmp.le.f32.partialorder %v706_v22, 15.0 }
  0xd1   : > { %1309 = vperm.xlu1 %2081, %v1142_v23   ;;  %1304 = vperm.xlu0 %2080, %v1141_v24   ;;  %v881_v23 = vadd.s32 1, %v1949_v12  ;;  %v1951_v24 = vcvt.f32.s32 %v1950_v13  ;;  %vm917_vm8 = vcmp.ge.s32.totalorder %v916_v25, 16  ;;  %vm919_vm9 = vcmp.ge.s32.totalorder %v916_v25, 32  ;;  %vm754_vm10 = vmand %vm722_vm4, %vm738_vm3 }
  0xd2   : > { %vm786_vm15 = vmand %vm754_vm10, %vm770_vm11 }
  0xd3   : > { %vm911_vm5 = vcmp.lt.s32.totalorder %v881_v23, 15  ;;  %v882_v27 = vadd.s32 1, %v1951_v24 }
  0xd4   : > { %v912_v29 = vsel %vm911_vm5, %v881_v23, 15 }
  0xd5   : > { %955 = vperm.xlu1 %2081, %v1941_v19   ;;  %2103 = vperm.xlu0 %2080, %v2102_v31   ;;  %v705_v19 = vadd.f32 %v1784_v11, %v1768_v10  ;;  %vm913_vm12 = vcmp.lt.s32.totalorder %v882_v27, 15  ;;  %v920_v31 = vsel %vm919_vm9, 1, %v2269_v4  ;;  %vm2272_vm9 = vmmov 0  }
  0xd6   : > { %v914_v34 = vsel %vm913_vm12, %v882_v27, 15  ;;  %1893 = vmatprep.mubr.msk.f32.mxu0 %vm2272_vm9, %v2270_v41 }
  0xd7   : > { %vm737_vm1 = vcmp.ge.f32.partialorder %v705_v19, 0.0  ;;  %vm801_vm14 = vcmp.le.f32.partialorder %v705_v19, 15.0 }
  0xd8   : > { %vm753_vm6 = vmand %vm721_vm2, %vm737_vm1 }
  0xd9   : > { %1051 = vperm.xlu1 %2081, %v904_v37   ;;  %958 = vperm.xlu0 %2080, %v1943_v30   ;;  %vm785_vm13 = vmand %vm753_vm6, %vm769_vm7  ;;  %v918_v30 = vsel %vm917_vm8, 1, %v2269_v4 }
  0xda   : > { %vm817_vm1 = vmand %vm785_vm13, %vm801_vm14  ;;  %v2769_v35 = vadd.s32 %v920_v31, %v918_v30 }
  0xdb   : > { %vm818_vm2 = vmand %vm786_vm15, %vm802_vm0  ;;  %v1800_v4 = vsel %vm817_vm1, 1.0, %v2270_v41 }
  0xdc   : > { %vm1149_vm5 = vcmp.eq.s32.totalorder %v2769_v35, 1  ;;  %vm1132_vm6 = vcmp.eq.s32.totalorder %v2769_v35, 0 }
  0xdd   : > { %1218 = vperm.xlu1 %2081, %v1160_v40   ;;  %1054 = vperm.xlu0 %2080, %v906_v42   ;;  %v1801_v40 = vsel %vm818_vm2, 1.0, %v2270_v41  ;;  %v922_v42 = vmul.u32 16, %v2769_v35 }
  0xdf   : > { %v2776_v48 = vsub.s32 %v916_v25, %v922_v42 }
  0xe1   : > { %1314 = vperm.xlu1 %2081, %v1143_v45   ;;  %1223 = vperm.xlu0 %2080, %v1161_v47   ;;  %v2117_v45 = vpack.i.bf16 %v1801_v40, %v1800_v4  ;;  %v1148_v47 = vsub.f32 0.0, %v2754_v1 }
  0xe5   : > { %2108 = vperm.xlu1 %2081, %v2107_v56   ;;  %1319 = vperm.xlu0 %2080, %v1144_v57  }
  0xe9   : > { %964 = vperm.xlu1 %2081, %v1947_v52   ;;  %961 = vperm.xlu0 %2080, %v1945_v53  }
  0xed   : > { %1060 = vperm.xlu1 %2081, %v910_v3   ;;  %1057 = vperm.xlu0 %2080, %v908_v5  }
  0xf1   : > { %1233 = vperm.xlu1 %2081, %v1163_v8   ;;  %1228 = vperm.xlu0 %2080, %v1162_v9  }
  0xf5   : > { %1329 = vperm.xlu1 %2081, %v1146_v17   ;;  %1324 = vperm.xlu0 %2080, %v1145_v18  }
  0xf7   : > { %v1174_v28 = vpop.permute.xlu1 %1173 }
  0xf8   : > { %v1247_v55 = vsel %vm1149_vm5, %v1174_v28, 1.0 }
  0xf9   : > { %967 = vperm.xlu1 %2081, %v1949_v12   ;;  %2113 = vperm.xlu0 %2080, %v2112_v26  }
  0xfc   : > { %v926_v32 = vpop.permute.xlu0 %925 }
  0xfd   : > { %1063 = vperm.xlu1 %2081, %v912_v29   ;;  %970 = vperm.xlu0 %2080, %v1951_v24   ;;  %vm972_vm7 = vcmp.eq.s32.totalorder %v2776_v48, %v926_v32 }
  0xfe   : > { %v1802_v59 = vsel %vm972_vm7, 1.0, %v2270_v41 }
 0x100   : > { %v929_v36 = vpop.permute.xlu0 %928  ;;  %v1022_v37 = vpop.permute.xlu1 %1021 }
 0x101   : > { %1238 = vperm.xlu1 %2081, %v1164_v33   ;;  %1066 = vperm.xlu0 %2080, %v914_v34   ;;  %vm1068_vm3 = vcmp.eq.s32.totalorder %v2776_v48, %v1022_v37  ;;  %vm973_vm8 = vcmp.eq.s32.totalorder %v2776_v48, %v929_v36 }
 0x102   : > { %v1818_v51 = vsel %vm1068_vm3, 1.0, %v2270_v41  ;;  %v1803_v60 = vsel %vm973_vm8, 1.0, %v2270_v41 }
 0x103   : > { %v1116_v63 = vadd.f32 %v1818_v51, %v1802_v59 }
 0x104   : > { %v1169_v43 = vpop.permute.xlu0 %1168  ;;  %v1025_v44 = vpop.permute.xlu1 %1024 }
 0x105   : > { %1334 = vperm.xlu1 %2081, %v1147_v38   ;;  %1243 = vperm.xlu0 %2080, %v1165_v39   ;;  %vm1069_vm4 = vcmp.eq.s32.totalorder %v2776_v48, %v1025_v44  ;;  %v1246_v56 = vsel %vm1149_vm5, %v1169_v43, 1.0 }
 0x106   : > { %v1819_v52 = vsel %vm1069_vm4, 1.0, %v2270_v41 }
 0x107   : > { %v1117_v0 = vadd.f32 %v1819_v52, %v1803_v60 }
 0x108   : > { %v1265_v49 = vpop.permute.xlu0 %1264  ;;  %v1270_v50 = vpop.permute.xlu1 %1269 }
 0x109   : > { %2118 = vperm.xlu1 %2081, %v2117_v45   ;;  %1339 = vperm.xlu0 %2080, %v1148_v47   ;;  %v1342_v61 = vsel %vm1132_vm6, %v1265_v49, %v1246_v56  ;;  %v1343_v62 = vsel %vm1132_vm6, %v1270_v50, %v1247_v55 }
 0x10c   : > { %v932_v53 = vpop.permute.xlu1 %931  ;;  %v2084_v54 = vpop.permute.xlu0 %2083 }
 0x10d   : > { %v2086_v57 = vunpack.i.h.bf16 %v2084_v54  ;;  %v2085_v58 = vunpack.i.l.bf16 %v2084_v54  ;;  %vm974_vm12 = vcmp.eq.s32.totalorder %v2776_v48, %v932_v53 }
 0x10e   : > { %v1804_v23 = vsel %vm974_vm12, 1.0, %v2270_v41 }
 0x10f   : > { %v1439_v1 = vmul.f32 %v2086_v57, %v1343_v62  ;;  %v1438_v2 = vmul.f32 %v2085_v58, %v1342_v61 }
 0x110   : > { %v1028_v3 = vpop.permute.xlu1 %1027  ;;  %v935_v5 = vpop.permute.xlu0 %934 }
 0x111   : > { %v1454_v6 = vmul.f32 %v1438_v2, %v1116_v63  ;;  %v1455_v7 = vmul.f32 %v1439_v1, %v1117_v0  ;;  %vm1070_vm10 = vcmp.eq.s32.totalorder %v2776_v48, %v1028_v3  ;;  %vm975_vm13 = vcmp.eq.s32.totalorder %v2776_v48, %v935_v5 }
 0x112   : > { %v1820_v13 = vsel %vm1070_vm10, 1.0, %v2270_v41  ;;  %v1805_v24 = vsel %vm975_vm13, 1.0, %v2270_v41 }
 0x113   : > { %v1897_v8 = vpack.c.bf16 %v1455_v7, %v1454_v6  ;;  %v1118_v26 = vadd.f32 %v1820_v13, %v1804_v23 }
 0x114   : > { %v1179_v9 = vpop.permute.xlu1 %1178  ;;  %v1031_v10 = vpop.permute.xlu0 %1030 }
 0x115   : > { %1898 = vmatpush3.bf16.msra.mxu0 %v1897_v8  ;;  %vm1071_vm11 = vcmp.eq.s32.totalorder %v2776_v48, %v1031_v10  ;;  %v1248_v19 = vsel %vm1149_vm5, %v1179_v9, 1.0 }
 0x116   : > { %1899 = vmatprep.subr.bf16.mxu0 %v2271_v46  ;;  %v1821_v14 = vsel %vm1071_vm11, 1.0, %v2270_v41 }
 0x117   : > { %v1119_v27 = vadd.f32 %v1821_v14, %v1805_v24 }
 0x118   : > { %v1275_v11 = vpop.permute.xlu1 %1274  ;;  %v1184_v12 = vpop.permute.xlu0 %1183 }
 0x119   : > { %v1249_v15 = vsel %vm1149_vm5, %v1184_v12, 1.0  ;;  %v1344_v25 = vsel %vm1132_vm6, %v1275_v11, %v1248_v19 }
 0x11c   : > { %v2089_v17 = vpop.permute.xlu1 %2088  ;;  %v1280_v18 = vpop.permute.xlu0 %1279 }
 0x11d   : > { %v2091_v20 = vunpack.i.h.bf16 %v2089_v17  ;;  %v2090_v21 = vunpack.i.l.bf16 %v2089_v17  ;;  %v1345_v22 = vsel %vm1132_vm6, %v1280_v18, %v1249_v15 }
 0x11f   : > { %v1440_v28 = vmul.f32 %v2090_v21, %v1344_v25  ;;  %v1441_v29 = vmul.f32 %v2091_v20, %v1345_v22 }
 0x120   : > { %v941_v30 = vpop.permute.xlu1 %940  ;;  %v938_v31 = vpop.permute.xlu0 %937 }
 0x121   : > { %v1456_v32 = vmul.f32 %v1440_v28, %v1118_v26  ;;  %v1457_v33 = vmul.f32 %v1441_v29, %v1119_v27  ;;  %vm977_vm0 = vcmp.eq.s32.totalorder %v2776_v48, %v941_v30  ;;  %vm976_vm1 = vcmp.eq.s32.totalorder %v2776_v48, %v938_v31 }
 0x122   : > { %v1807_v52 = vsel %vm977_vm0, 1.0, %v2270_v41  ;;  %v1806_v53 = vsel %vm976_vm1, 1.0, %v2270_v41 }
 0x123   : > { %v1900_v34 = vpack.c.bf16 %v1457_v33, %v1456_v32 }
 0x124   : > { %v1037_v36 = vpop.permute.xlu1 %1036  ;;  %v1034_v37 = vpop.permute.xlu0 %1033 }
 0x125   : > { %1901 = vmatpush3.bf16.msra.mxu0 %v1900_v34  ;;  %vm1073_vm14 = vcmp.eq.s32.totalorder %v2776_v48, %v1037_v36  ;;  %vm1072_vm15 = vcmp.eq.s32.totalorder %v2776_v48, %v1034_v37 }
 0x126   : > { %1902 = vmatprep.subr.bf16.mxu0 %v2271_v46  ;;  %v1823_v42 = vsel %vm1073_vm14, 1.0, %v2270_v41  ;;  %v1822_v43 = vsel %vm1072_vm15, 1.0, %v2270_v41 }
 0x127   : > { %v1121_v56 = vadd.f32 %v1823_v42, %v1807_v52  ;;  %v1120_v57 = vadd.f32 %v1822_v43, %v1806_v53 }
 0x128   : > { %v1194_v38 = vpop.permute.xlu1 %1193  ;;  %v1189_v39 = vpop.permute.xlu0 %1188 }
 0x129   : > { %v1251_v47 = vsel %vm1149_vm5, %v1194_v38, 1.0  ;;  %v1250_v49 = vsel %vm1149_vm5, %v1189_v39, 1.0 }
 0x12c   : > { %v1290_v4 = vpop.permute.xlu1 %1289  ;;  %v1285_v40 = vpop.permute.xlu0 %1284 }
 0x12d   : > { %v1347_v54 = vsel %vm1132_vm6, %v1290_v4, %v1251_v47  ;;  %v1346_v55 = vsel %vm1132_vm6, %v1285_v40, %v1250_v49 }
 0x130   : > { %v944_v44 = vpop.permute.xlu1 %943  ;;  %v2094_v45 = vpop.permute.xlu0 %2093 }
 0x131   : > { %v2096_v50 = vunpack.i.h.bf16 %v2094_v45  ;;  %v2095_v51 = vunpack.i.l.bf16 %v2094_v45  ;;  %vm978_vm4 = vcmp.eq.s32.totalorder %v2776_v48, %v944_v44 }
 0x132   : > { %v1808_v15 = vsel %vm978_vm4, 1.0, %v2270_v41 }
 0x133   : > { %v1443_v58 = vmul.f32 %v2096_v50, %v1347_v54  ;;  %v1442_v59 = vmul.f32 %v2095_v51, %v1346_v55 }
 0x134   : > { %v1040_v60 = vpop.permute.xlu1 %1039  ;;  %v947_v61 = vpop.permute.xlu0 %946 }
 0x135   : > { %v1459_v62 = vmul.f32 %v1443_v58, %v1121_v56  ;;  %v1458_v63 = vmul.f32 %v1442_v59, %v1120_v57  ;;  %vm1074_vm2 = vcmp.eq.s32.totalorder %v2776_v48, %v1040_v60  ;;  %vm979_vm7 = vcmp.eq.s32.totalorder %v2776_v48, %v947_v61 }
 0x136   : > { %v1824_v6 = vsel %vm1074_vm2, 1.0, %v2270_v41  ;;  %v1809_v17 = vsel %vm979_vm7, 1.0, %v2270_v41 }
 0x137   : > { %v1903_v0 = vpack.c.bf16 %v1459_v62, %v1458_v63  ;;  %v1122_v19 = vadd.f32 %v1824_v6, %v1808_v15 }
 0x138   : > { %v1199_v1 = vpop.permute.xlu1 %1198  ;;  %v1043_v2 = vpop.permute.xlu0 %1042 }
 0x139   : > { %1904 = vmatpush3.bf16.msra.mxu0 %v1903_v0  ;;  %vm1075_vm3 = vcmp.eq.s32.totalorder %v2776_v48, %v1043_v2  ;;  %v1252_v11 = vsel %vm1149_vm5, %v1199_v1, 1.0 }
 0x13a   : > { %1905 = vmatprep.subr.bf16.mxu0 %v2271_v46  ;;  %v1825_v7 = vsel %vm1075_vm3, 1.0, %v2270_v41 }
 0x13b   : > { %v1123_v20 = vadd.f32 %v1825_v7, %v1809_v17 }
 0x13c   : > { %v1295_v3 = vpop.permute.xlu1 %1294  ;;  %v1204_v5 = vpop.permute.xlu0 %1203 }
 0x13d   : > { %v1253_v8 = vsel %vm1149_vm5, %v1204_v5, 1.0  ;;  %v1348_v18 = vsel %vm1132_vm6, %v1295_v3, %v1252_v11 }
 0x140   : > { %v2099_v9 = vpop.permute.xlu1 %2098  ;;  %v1300_v10 = vpop.permute.xlu0 %1299 }
 0x141   : > { %v2101_v12 = vunpack.i.h.bf16 %v2099_v9  ;;  %v2100_v13 = vunpack.i.l.bf16 %v2099_v9  ;;  %v1349_v14 = vsel %vm1132_vm6, %v1300_v10, %v1253_v8 }
 0x143   : > { %v1444_v21 = vmul.f32 %v2100_v13, %v1348_v18  ;;  %v1445_v22 = vmul.f32 %v2101_v12, %v1349_v14 }
 0x144   : > { %v953_v23 = vpop.permute.xlu1 %952  ;;  %v950_v24 = vpop.permute.xlu0 %949 }
 0x145   : > { %v1460_v25 = vmul.f32 %v1444_v21, %v1122_v19  ;;  %v1461_v26 = vmul.f32 %v1445_v22, %v1123_v20  ;;  %vm981_vm10 = vcmp.eq.s32.totalorder %v2776_v48, %v953_v23  ;;  %vm980_vm11 = vcmp.eq.s32.totalorder %v2776_v48, %v950_v24  ;;  %v1470_v23 = vld [vmem:[%s598_s2] sm:$0x1]  ;;  %s3045_s2 = sld [smem:[#allocation8_spill]] }
 0x146   : > { %v1811_v43 = vsel %vm981_vm10, 1.0, %v2270_v41  ;;  %v1810_v44 = vsel %vm980_vm11, 1.0, %v2270_v41  ;;  %v1471_v24 = vld [vmem:[%s602_s18] sm:$0x1] }
 0x147   : > { %v1906_v27 = vpack.c.bf16 %v1461_v26, %v1460_v25 }
 0x148   : > { %v1049_v28 = vpop.permute.xlu1 %1048  ;;  %v1046_v29 = vpop.permute.xlu0 %1045 }
 0x149   : > { %1907 = vmatpush3.bf16.msra.mxu0 %v1906_v27  ;;  %vm1077_vm8 = vcmp.eq.s32.totalorder %v2776_v48, %v1049_v28  ;;  %vm1076_vm9 = vcmp.eq.s32.totalorder %v2776_v48, %v1046_v29  ;;  %v1472_v27 = vadd.f32 %v1471_v24, %v1470_v23 }
 0x14a   : > { %1908 = vmatprep.subr.bf16.mxu0 %v2271_v46  ;;  %v1827_v34 = vsel %vm1077_vm8, 1.0, %v2270_v41  ;;  %v1826_v36 = vsel %vm1076_vm9, 1.0, %v2270_v41 }
 0x14b   : > { %v1125_v49 = vadd.f32 %v1827_v34, %v1811_v43  ;;  %v1124_v50 = vadd.f32 %v1826_v36, %v1810_v44  ;;  %s1834_s5 = sshll.u32 %s3045_s2, 3 }
 0x14c   : > { %v1214_v30 = vpop.permute.xlu1 %1213  ;;  %v1209_v31 = vpop.permute.xlu0 %1208 }
 0x14d   : > { %v1255_v39 = vsel %vm1149_vm5, %v1214_v30, 1.0  ;;  %v1254_v4 = vsel %vm1149_vm5, %v1209_v31, 1.0  ;;  %v1952_v30 = vtrunc.f32 %v1472_v27 }
 0x14f   : > { %v1953_v36 = vcvt.f32.s32 %v1952_v30 }
 0x150   : > { %v1310_v32 = vpop.permute.xlu1 %1309  ;;  %v1305_v33 = vpop.permute.xlu0 %1304 }
 0x151   : > { %v1351_v45 = vsel %vm1132_vm6, %v1310_v32, %v1255_v39  ;;  %v1350_v47 = vsel %vm1132_vm6, %v1305_v33, %v1254_v4 }
 0x154   : > { %v956_v37 = vpop.permute.xlu1 %955  ;;  %v2104_v38 = vpop.permute.xlu0 %2103 }
 0x155   : > { %v2106_v40 = vunpack.i.h.bf16 %v2104_v38  ;;  %v2105_v42 = vunpack.i.l.bf16 %v2104_v38  ;;  %vm982_vm14 = vcmp.eq.s32.totalorder %v2776_v48, %v956_v37 }
 0x156   : > { %v1812_v8 = vsel %vm982_vm14, 1.0, %v2270_v41 }
 0x157   : > { %v1447_v51 = vmul.f32 %v2106_v40, %v1351_v45  ;;  %v1446_v52 = vmul.f32 %v2105_v42, %v1350_v47 }
 0x158   : > { %v1052_v53 = vpop.permute.xlu1 %1051  ;;  %v959_v54 = vpop.permute.xlu0 %958 }
 0x159   : > { %v1463_v55 = vmul.f32 %v1447_v51, %v1125_v49  ;;  %v1462_v56 = vmul.f32 %v1446_v52, %v1124_v50  ;;  %vm1078_vm12 = vcmp.eq.s32.totalorder %v2776_v48, %v1052_v53  ;;  %vm983_vm15 = vcmp.eq.s32.totalorder %v2776_v48, %v959_v54 }
 0x15a   : > { %v1828_v62 = vsel %vm1078_vm12, 1.0, %v2270_v41  ;;  %v1813_v9 = vsel %vm983_vm15, 1.0, %v2270_v41  ;;  %v1474_v53 = vadd.s32 1, %v1953_v36  ;;  %v1478_v54 = vshrl.u32 %v915_v16, 7 }
 0x15b   : > { %v1909_v57 = vpack.c.bf16 %v1463_v55, %v1462_v56  ;;  %v1126_v11 = vadd.f32 %v1828_v62, %v1812_v8 }
 0x15c   : > { %v1219_v58 = vpop.permute.xlu1 %1218  ;;  %v1055_v59 = vpop.permute.xlu0 %1054  ;;  %vm1475_vm4 = vcmp.lt.s32.totalorder %v1474_v53, 15 }
 0x15d   : > { %1910 = vmatpush3.bf16.msra.mxu0 %v1909_v57  ;;  %vm1079_vm13 = vcmp.eq.s32.totalorder %v2776_v48, %v1055_v59  ;;  %v1256_v3 = vsel %vm1149_vm5, %v1219_v58, 1.0  ;;  %v1476_v62 = vsel %vm1475_vm4, %v1474_v53, 15 }
 0x15e   : > { %1911 = vmatprep.subr.bf16.mxu0 %v2271_v46  ;;  %v1829_v63 = vsel %vm1079_vm13, 1.0, %v2270_v41  ;;  %vm1590_vm13 = vcmask (!%p1837_p10), 261248  }
 0x15f   : > { %v1127_v12 = vadd.f32 %v1829_v63, %v1813_v9 }
 0x160   : > { %v1315_v60 = vpop.permute.xlu1 %1314  ;;  %v1224_v61 = vpop.permute.xlu0 %1223 }
 0x161   : > { %v1257_v0 = vsel %vm1149_vm5, %v1224_v61, 1.0  ;;  %v1352_v10 = vsel %vm1132_vm6, %v1315_v60, %v1256_v3  ;;  %v1484_v60 = vsub.s32 0, %v1478_v54  ;;  %v1480_v61 = vstv %s1834_s5 }
 0x163   : > { %v1492_v16 = vrot.slane %v1476_v62, %v1484_v60 }
 0x164   : > { %v2109_v1 = vpop.permute.xlu1 %2108  ;;  %v1320_v2 = vpop.permute.xlu0 %1319 }
 0x165   : > { %v2111_v5 = vunpack.i.h.bf16 %v2109_v1  ;;  %v2110_v6 = vunpack.i.l.bf16 %v2109_v1  ;;  %v1353_v7 = vsel %vm1132_vm6, %v1320_v2, %v1257_v0  ;;  %v1481_v1 = vadd.s32 %v1480_v61, %v1478_v54 }
 0x166   : > { %v1485_v2 = vrot.slane %v1953_v36, %v1484_v60 }
 0x167   : > { %v1448_v13 = vmul.f32 %v2110_v6, %v1352_v10  ;;  %v1449_v14 = vmul.f32 %v2111_v5, %v1353_v7  ;;  %vm1493_vm12 = vcmp.eq.s32.totalorder %v1481_v1, %v1492_v16 }
 0x168   : > { %v965_v15 = vpop.permute.xlu1 %964  ;;  %v962_v17 = vpop.permute.xlu0 %961  ;;  %vm1486_vm11 = vcmp.eq.s32.totalorder %v1481_v1, %v1485_v2 }
 0x169   : > { %v1464_v18 = vmul.f32 %v1448_v13, %v1126_v11  ;;  %v1465_v19 = vmul.f32 %v1449_v14, %v1127_v12  ;;  %vm985_vm2 = vcmp.eq.s32.totalorder %v2776_v48, %v965_v15  ;;  %vm984_vm3 = vcmp.eq.s32.totalorder %v2776_v48, %v962_v17 }
 0x16a   : > { %v1815_v40 = vsel %vm985_vm2, 1.0, %v2270_v41  ;;  %v1814_v42 = vsel %vm984_vm3, 1.0, %v2270_v41 }
 0x16b   : > { %v1912_v20 = vpack.c.bf16 %v1465_v19, %v1464_v18 }
 0x16c   : > { %v1061_v21 = vpop.permute.xlu1 %1060  ;;  %v1058_v22 = vpop.permute.xlu0 %1057 }
 0x16d   : > { %1913 = vmatpush3.bf16.msra.mxu0 %v1912_v20  ;;  %vm1081_vm0 = vcmp.eq.s32.totalorder %v2776_v48, %v1061_v21  ;;  %vm1080_vm1 = vcmp.eq.s32.totalorder %v2776_v48, %v1058_v22  ;;  %v1835_v21 = vsel %vm1486_vm11, 1.0, %v2270_v41  ;;  %v1836_v22 = vsel %vm1493_vm12, 1.0, %v2270_v41 }
 0x16e   : > { %1914 = vmatprep.subr.bf16.mxu0 %v2271_v46  ;;  %v1831_v31 = vsel %vm1081_vm0, 1.0, %v2270_v41  ;;  %v1830_v32 = vsel %vm1080_vm1, 1.0, %v2270_v41  ;;  %v1496_v24 = vadd.f32 %v1836_v22, %v1835_v21 }
 0x16f   : > { %v1129_v45 = vadd.f32 %v1831_v31, %v1815_v40  ;;  %v1128_v47 = vadd.f32 %v1830_v32, %v1814_v42 }
 0x170   : > { %v1234_v25 = vpop.permute.xlu1 %1233  ;;  %v1229_v26 = vpop.permute.xlu0 %1228 }
 0x171   : > { %v1259_v37 = vsel %vm1149_vm5, %v1234_v25, 1.0  ;;  %v1258_v38 = vsel %vm1149_vm5, %v1229_v26, 1.0  ;;  %v1497_v25 = vld [vmem:[#allocation2] sm:$0xff] }
 0x174   : > { %v1330_v28 = vpop.permute.xlu1 %1329  ;;  %v1325_v29 = vpop.permute.xlu0 %1324 }
 0x175   : > { %v1355_v43 = vsel %vm1132_vm6, %v1330_v28, %v1259_v37  ;;  %v1354_v44 = vsel %vm1132_vm6, %v1325_v29, %v1258_v38 }
 0x178   : > { %v968_v33 = vpop.permute.xlu1 %967  ;;  %v2114_v34 = vpop.permute.xlu0 %2113 }
 0x179   : > { %v2116_v39 = vunpack.i.h.bf16 %v2114_v34  ;;  %v2115_v4 = vunpack.i.l.bf16 %v2114_v34  ;;  %vm986_vm9 = vcmp.eq.s32.totalorder %v2776_v48, %v968_v33 }
 0x17b   : > { %v1451_v49 = vmul.f32 %v2116_v39, %v1355_v43  ;;  %v1450_v50 = vmul.f32 %v2115_v4, %v1354_v44 }
 0x17c   : > { %v1064_v51 = vpop.permute.xlu1 %1063  ;;  %v971_v52 = vpop.permute.xlu0 %970 }
 0x17d   : > { %v1467_v55 = vmul.f32 %v1451_v49, %v1129_v45  ;;  %v1466_v56 = vmul.f32 %v1450_v50, %v1128_v47  ;;  %vm1082_vm7 = vcmp.eq.s32.totalorder %v2776_v48, %v1064_v51  ;;  %vm987_vm10 = vcmp.eq.s32.totalorder %v2776_v48, %v971_v52 }
 0x17e   : > { %v1832_v3 = vsel %vm1082_vm7, 1.0, %v2270_v41  ;;  %v1817_v12 = vsel %vm987_vm10, 1.0, %v2270_v41 }
 0x17f   : > { %v1915_v57 = vpack.c.bf16 %v1467_v55, %v1466_v56 }
 0x180   : > { %v1239_v58 = vpop.permute.xlu1 %1238  ;;  %v1067_v59 = vpop.permute.xlu0 %1066 }
 0x181   : > { %1916 = vmatpush3.bf16.msra.mxu0 %v1915_v57  ;;  %vm1083_vm8 = vcmp.eq.s32.totalorder %v2776_v48, %v1067_v59  ;;  %v1260_v8 = vsel %vm1149_vm5, %v1239_v58, 1.0  ;;  %v1816_v48 = vsel %vm986_vm9, 1.0, %v2270_v41 }
 0x182   : > { %1917 = vmatprep.subr.bf16.mxu0 %v2271_v46  ;;  %v1833_v5 = vsel %vm1083_vm8, 1.0, %v2270_v41  ;;  %v1130_v14 = vadd.f32 %v1832_v3, %v1816_v48 }
 0x183   : > { %v1131_v15 = vadd.f32 %v1833_v5, %v1817_v12 }
 0x184   : > { %v1335_v63 = vpop.permute.xlu1 %1334  ;;  %v1244_v0 = vpop.permute.xlu0 %1243 }
 0x185   : > { %v1261_v46 = vsel %vm1149_vm5, %v1244_v0, 1.0  ;;  %v1356_v13 = vsel %vm1132_vm6, %v1335_v63, %v1260_v8  ;;  %vm1569_vm5 = vcmask 392192  }
 0x188   : > { %v2119_v6 = vpop.permute.xlu1 %2118  ;;  %v1340_v7 = vpop.permute.xlu0 %1339 }
 0x189   : > { %v2121_v9 = vunpack.i.h.bf16 %v2119_v6  ;;  %v2120_v10 = vunpack.i.l.bf16 %v2119_v6  ;;  %v1357_v11 = vsel %vm1132_vm6, %v1340_v7, %v1261_v46  ;;  %vm1584_vm6 = vcmask (!%p1837_p10), 130048  }
 0x18b   : > { %v1452_v17 = vmul.f32 %v2120_v10, %v1356_v13  ;;  %v1453_v18 = vmul.f32 %v2121_v9, %v1357_v11 }
 0x18d   : > { %v1468_v19 = vmul.f32 %v1452_v17, %v1130_v14  ;;  %v1469_v20 = vmul.f32 %v1453_v18, %v1131_v15 }
 0x18f   : > { %v1918_v23 = vpack.c.bf16 %v1469_v20, %v1468_v19 }
 0x191   : > { %1919 = vmatpush3.bf16.msra.mxu0 %v1918_v23 }
 0x194   : > { %1894 = vmatmul.mubr.f32.vlgmr.msra.gmra.mrb[0].mxu0 %v1496_v24 }
 0x264   : > { %1574 = sbr.rel (%p1837_p10) target bundleno = 761 (0x2f9), region = 120 }
 0x267   : > { %v1564_v26 = vpop.f32.mrb[0].mxu0 }
 0x268   : > { %v1568_v35 = vadd.f32 %v1564_v26, %v1497_v25  ;;  %v1895_v27 = vpop.f32.mrb[1].mxu0 }
 0x26a   : > { %1570 = vst.msk [vmem:[#allocation2] sm:$0xff] %vm1569_vm5, %v1568_v35 }
 0x271   : > { %v1575_v28 = vld [vmem:[#allocation2] sm:$0xff] }
 0x272   : > { %v1576_v29 = vmax.f32 %v1575_v28, 1.0 }
 0x274   : > { %2122 = vrcp.f32 %v1576_v29 }
 0x27e   : > { %v2123_v30 = vpop.eup %2122 }
 0x27f   : > { %1580 = vrot.lane.b32.xlu0 %v2123_v30, %s2273_s8 }
 0x283   : > { %1586 = vrot.lane.b32.xlu0 %v2123_v30, %s2274_s9 }
 0x2f1   : > { %v1581_v41 = vpop.permute.xlu0 %1580 }
 0x2f2   : > { %v1583_v31 = vmul.f32 %v1581_v41, %v1575_v28 }
 0x2f4   : > { %1585 = vst.msk [vmem:[%s2613_s27] sm:$0xff] %vm1584_vm6, %v1583_v31 }
 0x2f5   : > { %v1587_v32 = vpop.permute.xlu0 %1586 }
 0x2f6   : > { %v1589_v33 = vmul.f32 %v1587_v32, %v1575_v28 }
 0x2f8   : > { %1591 = vst.msk [vmem:[%s2613_s27] sm:$0xff] %vm1590_vm13, %v1589_v33 }
 0x2f9 PF: > { %s3046_s22 = sld [smem:[#allocation8_spill]]  ;;  %s1839_s12 = sshll.u32 %s2250_s24, 1 }
 0x2fa   : > { %s1608_s30 = sshll.u32 %s2613_s27, 4  ;;  %s3047_s14 = sld [smem:[#allocation18_spill]]  ;;  %s2936_s30 = int_to_ptr.vmem [resolvable:$true] %s1608_s30 }
 0x2fb   : > { %s3048_s7 = sand.u32 1, %s2218_s16   ;;  %s2124_s10 = scalar_lea.vmem %s2936_s30, 128 }
 0x2fc   : > { %s1593_s11 = scalar_lea.sflag [#allocation6], %s3048_s7  ;;  %p2125_p11 = scmp.ne.s32.totalorder %s2936_s30, %s2124_s10 }
 0x2fd   : > { %s2275_s24 = smov [#allocation5]  }
 0x2fe   : > { %p2126_p12 = pnand %p2125_p11, %p2415_p13  ;;  %s2128_s29 = sshll.u32 %s2275_s24, 4  ;;  %s2129_s29 = int_to_ptr.vmem [resolvable:$false] %s2128_s29 }
 0x2ff   : > { %s1604_s13 = sadd.s32 %s3046_s22, %s1839_s12  ;;  %s2130_s27 = scalar_lea.vmem %s2129_s29, 256 }
 0x300   : > { %s1840_s18 = sshll.u32 %s1604_s13, 7  ;;  %p2127_p0 = pneg %p2126_p12 }
 0x301   : > { %s1606_s0 = scalar_lea.hbm %s3047_s14, %s1840_s18  ;;  %p2131_p1 = scmp.lt.s32.totalorder %s2936_s30, %s2129_s29 }
 0x302   : > { %p2132_p3 = scmp.lt.s32.totalorder %s2130_s27, %s2124_s10 }
 0x304   : > { %p2133_p4 = por %p2132_p3, %p2131_p1 }
 0x306   : > { %p2134_p5 = pnand %p2133_p4, %p2127_p0 }
 0x308   : > { %2137 = shalt.err (!%p2134_p5)
}
 0x309   : > { %s2138_s2 = scalar_lea.hbm %s1606_s0, 128  ;;  %s2142_s9 = scalar_lea.hbm %s3047_s14, 512 }
 0x30a   : > { %p2139_p6 = scmp.ne.s32.totalorder %s1606_s0, %s2138_s2  ;;  %p2143_p9 = scmp.lt.u32.totalorder %s1606_s0, %s3047_s14 }
 0x30b   : > { %p2144_p10 = scmp.lt.u32.totalorder %s2142_s9, %s2138_s2  ;;  %p2146_p12 = scmp.lt.u32.totalorder %s2138_s2, %s1606_s0 }
 0x30c   : > { %p2140_p7 = pnand %p2139_p6, %p2415_p13 }
 0x30d   : > { %p2145_p11 = por %p2144_p10, %p2143_p9 }
 0x30e   : > { %p2141_p8 = pneg %p2140_p7 }
 0x30f   : > { %p2147_p1 = por %p2146_p12, %p2145_p11 }
 0x311   : > { %p2148_p0 = pnand %p2147_p1, %p2141_p8 }
 0x313   : > { %2151 = shalt.err (!%p2148_p0)
}
 0x314   : > { %1954 = dma.vmem_to_hbm [thread:$0]  (%p2415_p13), %s2936_s30, 128, %s1606_s0, %s1593_s11  }
 0x315 PF: > { %p1960_p3 = scmp.ge.s32.totalorder %s2266_s28, 2  ;;  %s1620_s13 = sand.u32 1, %s2214_s15  }
 0x316   : > { %s1621_s18 = scalar_lea.sflag [#allocation6], %s1620_s13 }
 0x317   : > { %p1957_p4 = pnand %p1960_p3, %p2429_p2 }
 0x319   : > { %2209 = dma.done.wait (!%p1957_p4), %s1621_s18, 128  }
 0x31a   : > { %2211 = vsyncadd (!%p1957_p4), %s1621_s18, 4294967168  ;;  %s17_s28 = sadd.s32 1, %s2266_s28   ;;  %s3050_s4 = sld [smem:[#allocation13_spill]] }
 0x31b   : > { %p2964_p5 = scmp.ge.s32.totalorder %s17_s28, 10   ;;  %s3051_s23 = sld [smem:[#allocation9_spill]] }
 0x31c   : > { %s3052_s24 = sld [smem:[#allocation10_spill]]  ;;  %s3053_s1 = sld [smem:[#allocation11_spill]] }
 0x31d   : > { %s3054_s30 = sld [smem:[#allocation12_spill]]  ;;  %s3055_s27 = sld [smem:[#allocation14_spill]] }
 0x31e   : > { %s3057_s15 = smov %s2218_s16  ;;  %s3058_s16 = smov %s2222_s17 }
 0x31f   : > { %s3059_s17 = smov %s2425_s26  ;;  %s3060_s18 = smov %s2230_s19 }
 0x320   : > { %s3061_s19 = smov %s3050_s4  ;;  %s3062_s20 = smov %s2238_s21 }
 0x321   : > { %s3063_s21 = smov %s2422_s6  ;;  %s3064_s22 = smov %s2254_s25 }
 0x322   : > { %s3065_s25 = smov %s3053_s1  ;;  %16 = sbr.rel (!%p2964_p5) target bundleno = 13 (0xd), region = 176 }
 0x323   : > { %s3066_s26 = smov %s3054_s30 }
 0x329   :  { %1626 = vsyncpa [#allocation6], 1 }
 0x32a   :  { %1628 = vsyncpa [#allocation6 + $0x1], 1 }

</bundles_post_ra>
